<compile_context>
chip_gen: v7x
topology: tpu7x:2x2x1
jax: 0.10.0
libtpu: 0.0.40
codegen_flags: <defaults>
</compile_context>

<pallas_src>
import functools
import math

import jax
import jax.numpy as jnp
from jax import lax
from jax.experimental import pallas as pl
from jax.experimental.pallas import tpu as pltpu


_VMEM_LIMIT_BYTES = 32 * 1024 * 1024   # >= v5e's 16 MiB default scoped limit; safe on v7x.


# ----------------------------- quantizer (runs once per forward, in XLA) -----------------------

def _quantize(w, nbits):
    # TODO(synk): quantilization.Quantizer source not provided; symmetric uniform quantizer
    # with 2**nbits - 1 levels and per-tensor max-abs scale assumed.
    levels = jnp.float32(2 ** nbits - 1)
    m = jnp.max(jnp.abs(w))
    scale = jnp.where(m > 0, m, jnp.float32(1.0))
    return jnp.round(w * (levels / scale)) * (scale / levels)


# ----------------------------- VMEM budgeting helpers -----------------------------

def _ru(x, m):
    return -(-x // m) * m


def _pad2d(r, c, itemsize):
    # Conservative padded-VMEM estimate for a 2-D (r, c) tile (sublane quantum 16, lane 128).
    return _ru(r, 16) * _ru(c, 128) * itemsize


def _vmem_block_budget():
    cap = 128 * 1024 * 1024
    try:
        cap = int(pltpu.get_tpu_info().vmem_capacity_bytes)   # 128 MiB v5e/v6e, 64 MiB v7x
    except Exception:
        pass
    # Budget for the pipelined (double-buffered) per-row blocks; halve on small-VMEM parts.
    return (5 << 20) if cap <= (64 << 20) else (10 << 20)


def _pick_rows(total_rows, bytes_per_row, budget, quantum):
    rows = max(quantum, budget // max(bytes_per_row, 1))
    if rows >= total_rows:
        return total_rows
    return max(quantum, (rows // quantum) * quantum)


# ----------------------------- Pallas kernels -----------------------------

def _conv_pool_kernel(p_ref, w_ref, b_ref, o_ref):
    # p_ref: (4, mb, K) bf16 pool-window slabs; w_ref: (K, C) bf16 quantized weight;
    # b_ref: (1, C) f32 quantized bias; o_ref: (mb, C) f32.
    w = w_ref[...]
    d0 = jnp.dot(p_ref[0], w, preferred_element_type=jnp.float32)
    d1 = jnp.dot(p_ref[1], w, preferred_element_type=jnp.float32)
    d2 = jnp.dot(p_ref[2], w, preferred_element_type=jnp.float32)
    d3 = jnp.dot(p_ref[3], w, preferred_element_type=jnp.float32)
    # 2x2 maxpool = three pairwise maxima on (mb, C) slabs (VPU).
    pooled = jnp.maximum(jnp.maximum(d0, d1), jnp.maximum(d2, d3))
    # Bias + ReLU once, after the pool (max commutes with the monotone +b and ReLU).
    o_ref[...] = jnp.maximum(pooled + b_ref[...], 0.0).astype(o_ref.dtype)


def conv_relu_pool(p4, w, b):
    """conv-as-matmul + bias + ReLU + 2x2 maxpool on pre-quantized bf16 weights.

    p4: (4, M, K) bf16 patches, slab s = dy*2+dx of the pool window, rows in (n, ho, wo) order.
    w : (K, C) bf16 (quantized)   b: (1, C) f32 (quantized)   ->   (M, C) f32 pooled activation.
    """
    _, M, K = p4.shape
    C = w.shape[1]
    # VMEM-budgeted row tiling (double-buffered in/out blocks + resident-weight reserve).
    per_row = 2 * 4 * _ru(K, 128) * p4.dtype.itemsize + 2 * _ru(C, 128) * 4
    reserve = 2 * (_pad2d(K, C, w.dtype.itemsize) + _pad2d(1, C, 4))
    mb = _pick_rows(M, per_row, max(_vmem_block_budget() - reserve, 1 << 20), 16)
    return pl.pallas_call(
        _conv_pool_kernel,
        grid=(pl.cdiv(M, mb),),
        in_specs=[
            pl.BlockSpec((4, mb, K), lambda i: (0, i, 0)),
            pl.BlockSpec((K, C), lambda i: (0, 0)),      # weight resident across steps
            pl.BlockSpec((1, C), lambda i: (0, 0)),
        ],
        out_specs=pl.BlockSpec((mb, C), lambda i: (i, 0)),
        out_shape=jax.ShapeDtypeStruct((M, C), jnp.float32),
        compiler_params=pltpu.CompilerParams(
            dimension_semantics=("parallel",),
            vmem_limit_bytes=_VMEM_LIMIT_BYTES),
    )(p4, w, b)


def _fc_kernel(x_ref, w1_ref, b1_ref, w2_ref, b2_ref, o_ref):
    h = jnp.dot(x_ref[...], w1_ref[...],
                preferred_element_type=jnp.float32) + b1_ref[...]
    h = jnp.maximum(h, 0.0).astype(w2_ref.dtype)
    out = jnp.dot(h, w2_ref[...],
                  preferred_element_type=jnp.float32) + b2_ref[...]
    o_ref[...] = out.astype(o_ref.dtype)


def fc_fused(x, w1, b1, w2, b2):
    """Fused classifier on pre-quantized bf16 weights: x@w1+b1, ReLU, @w2+b2.
    Row-tiled over the batch with weight blocks resident across grid steps."""
    M, K1 = x.shape
    H = w1.shape[1]
    C = w2.shape[1]
    per_row = (2 * _ru(K1, 128) * x.dtype.itemsize      # x block (double-buffered)
               + 2 * _ru(C, 128) * 4                    # out block (double-buffered)
               + _ru(H, 128) * 4)                       # f32 hidden intermediate
    reserve = 2 * (_pad2d(K1, H, w1.dtype.itemsize) + _pad2d(H, C, w2.dtype.itemsize)
                   + _pad2d(1, H, 4) + _pad2d(1, C, 4))
    mb = _pick_rows(M, per_row, max(_vmem_block_budget() - reserve, 1 << 20), 8)
    return pl.pallas_call(
        _fc_kernel,
        grid=(pl.cdiv(M, mb),),
        in_specs=[
            pl.BlockSpec((mb, K1), lambda i: (i, 0)),
            pl.BlockSpec((K1, H), lambda i: (0, 0)),
            pl.BlockSpec((1, H), lambda i: (0, 0)),
            pl.BlockSpec((H, C), lambda i: (0, 0)),
            pl.BlockSpec((1, C), lambda i: (0, 0)),
        ],
        out_specs=pl.BlockSpec((mb, C), lambda i: (i, 0)),
        out_shape=jax.ShapeDtypeStruct((M, C), jnp.float32),
        compiler_params=pltpu.CompilerParams(
            dimension_semantics=("parallel",),
            vmem_limit_bytes=_VMEM_LIMIT_BYTES),
    )(x, w1, b1, w2, b2)


# ----------------------------- params -----------------------------

def init_params(key):
    ks = jax.random.split(key, 8)

    def u(k, shape, fan_in):
        bound = 1.0 / math.sqrt(fan_in)
        return jax.random.uniform(k, shape, jnp.float32, -bound, bound)

    return {
        "conv1_w": u(ks[0], (20, 1, 5, 5), 1 * 5 * 5),
        "conv1_b": u(ks[1], (20,), 1 * 5 * 5),
        "conv2_w": u(ks[2], (50, 20, 5, 5), 20 * 5 * 5),
        "conv2_b": u(ks[3], (50,), 20 * 5 * 5),
        "fc1_w": u(ks[4], (500, 800), 800),
        "fc1_b": u(ks[5], (500,), 800),
        "fc2_w": u(ks[6], (10, 500), 500),
        "fc2_b": u(ks[7], (10,), 500),
    }


def prepare_params(params):
    """One-time (outside jit) layout prep. Per-tensor quantization commutes with these
    permutations, so quantizing the prepped tensors matches the reference."""
    w1c = params["conv1_w"].reshape(20, 25).T                         # (25, 20), K = (cin,kh,kw)
    b1c = params["conv1_b"].reshape(1, 20)
    w2c = params["conv2_w"].reshape(50, 20 * 25).T                    # (500, 50)
    b2c = params["conv2_b"].reshape(1, 50)
    # fc1: reorder K axis from CHW (PyTorch NCHW flatten) to HWC so the NHWC conv output
    # feeds it directly without a runtime permute.
    w1f = (params["fc1_w"].reshape(500, 50, 4, 4)
           .transpose(0, 2, 3, 1).reshape(500, 800).T)                # (800, 500)
    b1f = params["fc1_b"].reshape(1, 500)
    w2f = params["fc2_w"].T                                           # (500, 10)
    b2f = params["fc2_b"].reshape(1, 10)
    return dict(w1c=w1c, b1c=b1c, w2c=w2c, b2c=b2c,
                w1f=w1f, b1f=b1f, w2f=w2f, b2f=b2f)


# ----------------------------- im2col glue -----------------------------

def _pool_slab_patches(x, dims, kh, kw):
    """Extract conv patches (single fused XLA op), cast to bf16, and arrange them as
    (4, N*HO*WO, K) pool-window slabs: slab s = dy*2 + dx holds the patches of output pixel
    (2ho+dy, 2wo+dx), rows ordered (n, ho, wo). Feature order is (cin, kh, kw)."""
    # TODO(synk): the slab transpose below is an extra HBM pass over the largest tensor; it
    # could be removed with in-kernel strided pooling (or slab-indexed BlockSpecs).
    p = lax.conv_general_dilated_patches(x, (kh, kw), (1, 1), "VALID",
                                         dimension_numbers=dims)      # (N, OH, OW, K)
    p = p.astype(jnp.bfloat16)                                         # halve HBM traffic
    N, OH, OW, K = p.shape
    HO, WO = OH // 2, OW // 2
    p = p.reshape(N, HO, 2, WO, 2, K).transpose(2, 4, 0, 1, 3, 5)     # (dy, dx, n, ho, wo, K)
    return p.reshape(4, N * HO * WO, K), HO, WO


# ----------------------------- forward -----------------------------

def conv_and_fc_quan_forward(prepped, x, nbits, do_linear):
    if not do_linear:
        # TODO(synk): Quantizer_nonlinear semantics unavailable; falling back to linear quantizer.
        pass

    # Quantize parameters once per forward (matches the PyTorch forward, which quantizes,
    # runs, then restores). Hoisted out of the Pallas kernels so the abs-max/round/scale work
    # never repeats per grid step; matmul operands are cast to bf16 (biases stay f32).
    q = functools.partial(_quantize, nbits=nbits)
    w1c = q(prepped["w1c"]).astype(jnp.bfloat16); b1c = q(prepped["b1c"])
    w2c = q(prepped["w2c"]).astype(jnp.bfloat16); b2c = q(prepped["b2c"])
    w1f = q(prepped["w1f"]).astype(jnp.bfloat16); b1f = q(prepped["b1f"])
    w2f = q(prepped["w2f"]).astype(jnp.bfloat16); b2f = q(prepped["b2f"])

    N = x.shape[0]

    # Conv2d(1,20,5,1) -> ReLU -> MaxPool(2,2)
    p1, ho1, wo1 = _pool_slab_patches(x, ("NCHW", "OIHW", "NHWC"), 5, 5)   # (4, N*144, 25)
    y = conv_relu_pool(p1, w1c, b1c)                                       # (N*144, 20)
    y = y.reshape(N, ho1, wo1, 20)                                         # NHWC (N,12,12,20)

    # Conv2d(20,50,5,1) -> ReLU -> MaxPool(2,2)
    p2, ho2, wo2 = _pool_slab_patches(y, ("NHWC", "HWIO", "NHWC"), 5, 5)   # (4, N*16, 500)
    y = conv_relu_pool(p2, w2c, b2c)                                       # (N*16, 50)

    # Flatten: rows are (n, ho, wo), cols are c -> per-sample HWC order; fc1 weight was
    # pre-permuted to HWC so this matches PyTorch's NCHW x.view(-1, 800) exactly.
    # TODO(synk): conv2 + fc could be fused into one pallas_call (needs an in-kernel lane
    # regroup of the (nb,16,50) pooled block to (nb,800)); kept separate for lowering safety.
    x_flat = y.reshape(N, ho2 * wo2 * 50).astype(jnp.bfloat16)             # (N, 800)

    # Linear(800,500) -> ReLU -> Linear(500,10), fused in one Pallas call.
    return fc_fused(x_flat, w1f, b1f, w2f, b2f)


if __name__ == "__main__":
    key = jax.random.PRNGKey(0)
    pkey, xkey = jax.random.split(key)
    params = init_params(pkey)
    prepped = prepare_params(params)          # one-time layout prep, outside jit

    # Input must be 28x28 so the feature output flattens to 4*4*50 = 800.
    x = jax.random.normal(xkey, (2, 1, 28, 28), jnp.float32)

    fwd = jax.jit(functools.partial(conv_and_fc_quan_forward, nbits=4, do_linear=True))
    out = fwd(prepped, x)
    jax.block_until_ready(out)
    assert out.shape == (2, 10)
    print("KERNEL_OK")
</pallas_src>

<mosaic_0001>
module attributes {stable_mosaic.version = 11 : i64} {
  func.func @_conv_pool_kernel(%arg0: i32, %arg1: memref<4x288x25xbf16, #tpu.memory_space<vmem>>, %arg2: memref<25x20xbf16, #tpu.memory_space<vmem>>, %arg3: memref<1x20xf32, #tpu.memory_space<vmem>>, %arg4: memref<288x20xf32, #tpu.memory_space<vmem>>) attributes {dimension_semantics = [#tpu.dimension_semantics<parallel>], iteration_bounds = array<i64: 1>, scalar_prefetch = 0 : i64, scratch_operands = 0 : i64, tpu.core_type = #tpu.core_type<tc>, window_params = [{transform_indices = @transform_0, window_bounds = array<i64: 4, 288, 25>}, {pipeline_mode = #tpu.pipeline_mode<synchronous>, transform_indices = @transform_1, window_bounds = array<i64: 25, 20>}, {pipeline_mode = #tpu.pipeline_mode<synchronous>, transform_indices = @transform_2, window_bounds = array<i64: 1, 20>}, {transform_indices = @transform_3, window_bounds = array<i64: 288, 20>}]} {
    %c0 = arith.constant 0 : index
    %c0_0 = arith.constant 0 : index
    %0 = vector.load %arg2[%c0, %c0_0] : memref<25x20xbf16, #tpu.memory_space<vmem>>, vector<25x20xbf16>
    %c0_1 = arith.constant 0 : index
    %c0_2 = arith.constant 0 : index
    %c0_3 = arith.constant 0 : index
    %1 = vector.load %arg1[%c0_1, %c0_2, %c0_3] : memref<4x288x25xbf16, #tpu.memory_space<vmem>>, vector<1x288x25xbf16>
    %2 = vector.shape_cast %1 : vector<1x288x25xbf16> to vector<288x25xbf16>
    %cst = arith.constant dense<0.000000e+00> : vector<288x20xf32>
    %3 = tpu.matmul %2, %0, %cst {dimension_numbers = #tpu.dot_dimension_numbers<[1], [0], [0], [1], [0, 0, 1, 1], [], []>} : vector<288x25xbf16>, vector<25x20xbf16>, vector<288x20xf32> -> vector<288x20xf32>
    %c1 = arith.constant 1 : index
    %c0_4 = arith.constant 0 : index
    %c0_5 = arith.constant 0 : index
    %4 = vector.load %arg1[%c1, %c0_4, %c0_5] : memref<4x288x25xbf16, #tpu.memory_space<vmem>>, vector<1x288x25xbf16>
    %5 = vector.shape_cast %4 : vector<1x288x25xbf16> to vector<288x25xbf16>
    %cst_6 = arith.constant dense<0.000000e+00> : vector<288x20xf32>
    %6 = tpu.matmul %5, %0, %cst_6 {dimension_numbers = #tpu.dot_dimension_numbers<[1], [0], [0], [1], [0, 0, 1, 1], [], []>} : vector<288x25xbf16>, vector<25x20xbf16>, vector<288x20xf32> -> vector<288x20xf32>
    %c2 = arith.constant 2 : index
    %c0_7 = arith.constant 0 : index
    %c0_8 = arith.constant 0 : index
    %7 = vector.load %arg1[%c2, %c0_7, %c0_8] : memref<4x288x25xbf16, #tpu.memory_space<vmem>>, vector<1x288x25xbf16>
    %8 = vector.shape_cast %7 : vector<1x288x25xbf16> to vector<288x25xbf16>
    %cst_9 = arith.constant dense<0.000000e+00> : vector<288x20xf32>
    %9 = tpu.matmul %8, %0, %cst_9 {dimension_numbers = #tpu.dot_dimension_numbers<[1], [0], [0], [1], [0, 0, 1, 1], [], []>} : vector<288x25xbf16>, vector<25x20xbf16>, vector<288x20xf32> -> vector<288x20xf32>
    %c3 = arith.constant 3 : index
    %c0_10 = arith.constant 0 : index
    %c0_11 = arith.constant 0 : index
    %10 = vector.load %arg1[%c3, %c0_10, %c0_11] : memref<4x288x25xbf16, #tpu.memory_space<vmem>>, vector<1x288x25xbf16>
    %11 = vector.shape_cast %10 : vector<1x288x25xbf16> to vector<288x25xbf16>
    %cst_12 = arith.constant dense<0.000000e+00> : vector<288x20xf32>
    %12 = tpu.matmul %11, %0, %cst_12 {dimension_numbers = #tpu.dot_dimension_numbers<[1], [0], [0], [1], [0, 0, 1, 1], [], []>} : vector<288x25xbf16>, vector<25x20xbf16>, vector<288x20xf32> -> vector<288x20xf32>
    %13 = arith.maximumf %3, %6 : vector<288x20xf32>
    %14 = arith.maximumf %9, %12 : vector<288x20xf32>
    %15 = arith.maximumf %13, %14 : vector<288x20xf32>
    %c0_13 = arith.constant 0 : index
    %c0_14 = arith.constant 0 : index
    %16 = vector.load %arg3[%c0_13, %c0_14] : memref<1x20xf32, #tpu.memory_space<vmem>>, vector<1x20xf32>
    %17 = vector.broadcast %16 : vector<1x20xf32> to vector<288x20xf32>
    %18 = arith.addf %15, %17 : vector<288x20xf32>
    %cst_15 = arith.constant 0.000000e+00 : f32
    %19 = vector.broadcast %cst_15 : f32 to vector<288x20xf32>
    %20 = arith.maximumf %18, %19 : vector<288x20xf32>
    %c0_16 = arith.constant 0 : index
    %c0_17 = arith.constant 0 : index
    %21 = vector.load %arg4[%c0_16, %c0_17] : memref<288x20xf32, #tpu.memory_space<vmem>>, vector<288x20xf32>
    tpu.vector_store %arg4[%c0_16, %c0_17], %20 {strides = array<i32>} : memref<288x20xf32, #tpu.memory_space<vmem>>, vector<288x20xf32>,
    return
  }
  func.func @transform_0(%arg0: i32) -> (i32, i32, i32) {
    %c0_i32 = arith.constant 0 : i32
    %c0_i32_0 = arith.constant 0 : i32
    %c0_i32_1 = arith.constant 0 : i32
    return %c0_i32, %arg0, %c0_i32_0 : i32, i32, i32
  }
  func.func @transform_1(%arg0: i32) -> (i32, i32) {
    %c0_i32 = arith.constant 0 : i32
    %c0_i32_0 = arith.constant 0 : i32
    %c0_i32_1 = arith.constant 0 : i32
    return %c0_i32, %c0_i32_0 : i32, i32
  }
  func.func @transform_2(%arg0: i32) -> (i32, i32) {
    %c0_i32 = arith.constant 0 : i32
    %c0_i32_0 = arith.constant 0 : i32
    %c0_i32_1 = arith.constant 0 : i32
    return %c0_i32, %c0_i32_0 : i32, i32
  }
  func.func @transform_3(%arg0: i32) -> (i32, i32) {
    %c0_i32 = arith.constant 0 : i32
    %c0_i32_0 = arith.constant 0 : i32
    return %arg0, %c0_i32 : i32, i32
  }
}

module attributes {stable_mosaic.version = 11 : i64} {
  func.func @_conv_pool_kernel(%arg0: i32, %arg1: memref<4x32x500xbf16, #tpu.memory_space<vmem>>, %arg2: memref<500x50xbf16, #tpu.memory_space<vmem>>, %arg3: memref<1x50xf32, #tpu.memory_space<vmem>>, %arg4: memref<32x50xf32, #tpu.memory_space<vmem>>) attributes {dimension_semantics = [#tpu.dimension_semantics<parallel>], iteration_bounds = array<i64: 1>, scalar_prefetch = 0 : i64, scratch_operands = 0 : i64, tpu.core_type = #tpu.core_type<tc>, window_params = [{transform_indices = @transform_0, window_bounds = array<i64: 4, 32, 500>}, {pipeline_mode = #tpu.pipeline_mode<synchronous>, transform_indices = @transform_1, window_bounds = array<i64: 500, 50>}, {pipeline_mode = #tpu.pipeline_mode<synchronous>, transform_indices = @transform_2, window_bounds = array<i64: 1, 50>}, {transform_indices = @transform_3, window_bounds = array<i64: 32, 50>}]} {
    %c0 = arith.constant 0 : index
    %c0_0 = arith.constant 0 : index
    %0 = vector.load %arg2[%c0, %c0_0] : memref<500x50xbf16, #tpu.memory_space<vmem>>, vector<500x50xbf16>
    %c0_1 = arith.constant 0 : index
    %c0_2 = arith.constant 0 : index
    %c0_3 = arith.constant 0 : index
    %1 = vector.load %arg1[%c0_1, %c0_2, %c0_3] : memref<4x32x500xbf16, #tpu.memory_space<vmem>>, vector<1x32x500xbf16>
    %2 = vector.shape_cast %1 : vector<1x32x500xbf16> to vector<32x500xbf16>
    %cst = arith.constant dense<0.000000e+00> : vector<32x50xf32>
    %3 = tpu.matmul %2, %0, %cst {dimension_numbers = #tpu.dot_dimension_numbers<[1], [0], [0], [1], [0, 0, 1, 1], [], []>} : vector<32x500xbf16>, vector<500x50xbf16>, vector<32x50xf32> -> vector<32x50xf32>
    %c1 = arith.constant 1 : index
    %c0_4 = arith.constant 0 : index
    %c0_5 = arith.constant 0 : index
    %4 = vector.load %arg1[%c1, %c0_4, %c0_5] : memref<4x32x500xbf16, #tpu.memory_space<vmem>>, vector<1x32x500xbf16>
    %5 = vector.shape_cast %4 : vector<1x32x500xbf16> to vector<32x500xbf16>
    %cst_6 = arith.constant dense<0.000000e+00> : vector<32x50xf32>
    %6 = tpu.matmul %5, %0, %cst_6 {dimension_numbers = #tpu.dot_dimension_numbers<[1], [0], [0], [1], [0, 0, 1, 1], [], []>} : vector<32x500xbf16>, vector<500x50xbf16>, vector<32x50xf32> -> vector<32x50xf32>
    %c2 = arith.constant 2 : index
    %c0_7 = arith.constant 0 : index
    %c0_8 = arith.constant 0 : index
    %7 = vector.load %arg1[%c2, %c0_7, %c0_8] : memref<4x32x500xbf16, #tpu.memory_space<vmem>>, vector<1x32x500xbf16>
    %8 = vector.shape_cast %7 : vector<1x32x500xbf16> to vector<32x500xbf16>
    %cst_9 = arith.constant dense<0.000000e+00> : vector<32x50xf32>
    %9 = tpu.matmul %8, %0, %cst_9 {dimension_numbers = #tpu.dot_dimension_numbers<[1], [0], [0], [1], [0, 0, 1, 1], [], []>} : vector<32x500xbf16>, vector<500x50xbf16>, vector<32x50xf32> -> vector<32x50xf32>
    %c3 = arith.constant 3 : index
    %c0_10 = arith.constant 0 : index
    %c0_11 = arith.constant 0 : index
    %10 = vector.load %arg1[%c3, %c0_10, %c0_11] : memref<4x32x500xbf16, #tpu.memory_space<vmem>>, vector<1x32x500xbf16>
    %11 = vector.shape_cast %10 : vector<1x32x500xbf16> to vector<32x500xbf16>
    %cst_12 = arith.constant dense<0.000000e+00> : vector<32x50xf32>
    %12 = tpu.matmul %11, %0, %cst_12 {dimension_numbers = #tpu.dot_dimension_numbers<[1], [0], [0], [1], [0, 0, 1, 1], [], []>} : vector<32x500xbf16>, vector<500x50xbf16>, vector<32x50xf32> -> vector<32x50xf32>
    %13 = arith.maximumf %3, %6 : vector<32x50xf32>
    %14 = arith.maximumf %9, %12 : vector<32x50xf32>
    %15 = arith.maximumf %13, %14 : vector<32x50xf32>
    %c0_13 = arith.constant 0 : index
    %c0_14 = arith.constant 0 : index
    %16 = vector.load %arg3[%c0_13, %c0_14] : memref<1x50xf32, #tpu.memory_space<vmem>>, vector<1x50xf32>
    %17 = vector.broadcast %16 : vector<1x50xf32> to vector<32x50xf32>
    %18 = arith.addf %15, %17 : vector<32x50xf32>
    %cst_15 = arith.constant 0.000000e+00 : f32
    %19 = vector.broadcast %cst_15 : f32 to vector<32x50xf32>
    %20 = arith.maximumf %18, %19 : vector<32x50xf32>
    %c0_16 = arith.constant 0 : index
    %c0_17 = arith.constant 0 : index
    %21 = vector.load %arg4[%c0_16, %c0_17] : memref<32x50xf32, #tpu.memory_space<vmem>>, vector<32x50xf32>
    tpu.vector_store %arg4[%c0_16, %c0_17], %20 {strides = array<i32>} : memref<32x50xf32, #tpu.memory_space<vmem>>, vector<32x50xf32>,
    return
  }
  func.func @transform_0(%arg0: i32) -> (i32, i32, i32) {
    %c0_i32 = arith.constant 0 : i32
    %c0_i32_0 = arith.constant 0 : i32
    %c0_i32_1 = arith.constant 0 : i32
    return %c0_i32, %arg0, %c0_i32_0 : i32, i32, i32
  }
  func.func @transform_1(%arg0: i32) -> (i32, i32) {
    %c0_i32 = arith.constant 0 : i32
    %c0_i32_0 = arith.constant 0 : i32
    %c0_i32_1 = arith.constant 0 : i32
    return %c0_i32, %c0_i32_0 : i32, i32
  }
  func.func @transform_2(%arg0: i32) -> (i32, i32) {
    %c0_i32 = arith.constant 0 : i32
    %c0_i32_0 = arith.constant 0 : i32
    %c0_i32_1 = arith.constant 0 : i32
    return %c0_i32, %c0_i32_0 : i32, i32
  }
  func.func @transform_3(%arg0: i32) -> (i32, i32) {
    %c0_i32 = arith.constant 0 : i32
    %c0_i32_0 = arith.constant 0 : i32
    return %arg0, %c0_i32 : i32, i32
  }
}

module attributes {stable_mosaic.version = 11 : i64} {
  func.func @_fc_kernel(%arg0: i32, %arg1: memref<2x800xbf16, #tpu.memory_space<vmem>>, %arg2: memref<800x500xbf16, #tpu.memory_space<vmem>>, %arg3: memref<1x500xf32, #tpu.memory_space<vmem>>, %arg4: memref<500x10xbf16, #tpu.memory_space<vmem>>, %arg5: memref<1x10xf32, #tpu.memory_space<vmem>>, %arg6: memref<2x10xf32, #tpu.memory_space<vmem>>) attributes {dimension_semantics = [#tpu.dimension_semantics<parallel>], iteration_bounds = array<i64: 1>, scalar_prefetch = 0 : i64, scratch_operands = 0 : i64, tpu.core_type = #tpu.core_type<tc>, window_params = [{transform_indices = @transform_0, window_bounds = array<i64: 2, 800>}, {pipeline_mode = #tpu.pipeline_mode<synchronous>, transform_indices = @transform_1, window_bounds = array<i64: 800, 500>}, {pipeline_mode = #tpu.pipeline_mode<synchronous>, transform_indices = @transform_2, window_bounds = array<i64: 1, 500>}, {pipeline_mode = #tpu.pipeline_mode<synchronous>, transform_indices = @transform_3, window_bounds = array<i64: 500, 10>}, {pipeline_mode = #tpu.pipeline_mode<synchronous>, transform_indices = @transform_4, window_bounds = array<i64: 1, 10>}, {transform_indices = @transform_5, window_bounds = array<i64: 2, 10>}]} {
    %c0 = arith.constant 0 : index
    %c0_0 = arith.constant 0 : index
    %0 = vector.load %arg1[%c0, %c0_0] : memref<2x800xbf16, #tpu.memory_space<vmem>>, vector<2x800xbf16>
    %c0_1 = arith.constant 0 : index
    %c0_2 = arith.constant 0 : index
    %1 = vector.load %arg2[%c0_1, %c0_2] : memref<800x500xbf16, #tpu.memory_space<vmem>>, vector<800x500xbf16>
    %cst = arith.constant dense<0.000000e+00> : vector<2x500xf32>
    %2 = tpu.matmul %0, %1, %cst {dimension_numbers = #tpu.dot_dimension_numbers<[1], [0], [0], [1], [0, 0, 1, 1], [], []>} : vector<2x800xbf16>, vector<800x500xbf16>, vector<2x500xf32> -> vector<2x500xf32>
    %c0_3 = arith.constant 0 : index
    %c0_4 = arith.constant 0 : index
    %3 = vector.load %arg3[%c0_3, %c0_4] : memref<1x500xf32, #tpu.memory_space<vmem>>, vector<1x500xf32>
    %4 = vector.broadcast %3 : vector<1x500xf32> to vector<2x500xf32>
    %5 = arith.addf %2, %4 : vector<2x500xf32>
    %cst_5 = arith.constant 0.000000e+00 : f32
    %6 = vector.broadcast %cst_5 : f32 to vector<2x500xf32>
    %7 = arith.maximumf %5, %6 : vector<2x500xf32>
    %8 = arith.truncf %7 : vector<2x500xf32> to vector<2x500xbf16>
    %c0_6 = arith.constant 0 : index
    %c0_7 = arith.constant 0 : index
    %9 = vector.load %arg4[%c0_6, %c0_7] : memref<500x10xbf16, #tpu.memory_space<vmem>>, vector<500x10xbf16>
    %cst_8 = arith.constant dense<0.000000e+00> : vector<2x10xf32>
    %10 = tpu.matmul %8, %9, %cst_8 {dimension_numbers = #tpu.dot_dimension_numbers<[1], [0], [0], [1], [0, 0, 1, 1], [], []>} : vector<2x500xbf16>, vector<500x10xbf16>, vector<2x10xf32> -> vector<2x10xf32>
    %c0_9 = arith.constant 0 : index
    %c0_10 = arith.constant 0 : index
    %11 = vector.load %arg5[%c0_9, %c0_10] : memref<1x10xf32, #tpu.memory_space<vmem>>, vector<1x10xf32>
    %12 = vector.broadcast %11 : vector<1x10xf32> to vector<2x10xf32>
    %13 = arith.addf %10, %12 : vector<2x10xf32>
    %c0_11 = arith.constant 0 : index
    %c0_12 = arith.constant 0 : index
    %14 = vector.load %arg6[%c0_11, %c0_12] : memref<2x10xf32, #tpu.memory_space<vmem>>, vector<2x10xf32>
    tpu.vector_store %arg6[%c0_11, %c0_12], %13 {strides = array<i32>} : memref<2x10xf32, #tpu.memory_space<vmem>>, vector<2x10xf32>,
    return
  }
  func.func @transform_0(%arg0: i32) -> (i32, i32) {
    %c0_i32 = arith.constant 0 : i32
    %c0_i32_0 = arith.constant 0 : i32
    return %arg0, %c0_i32 : i32, i32
  }
  func.func @transform_1(%arg0: i32) -> (i32, i32) {
    %c0_i32 = arith.constant 0 : i32
    %c0_i32_0 = arith.constant 0 : i32
    %c0_i32_1 = arith.constant 0 : i32
    return %c0_i32, %c0_i32_0 : i32, i32
  }
  func.func @transform_2(%arg0: i32) -> (i32, i32) {
    %c0_i32 = arith.constant 0 : i32
    %c0_i32_0 = arith.constant 0 : i32
    %c0_i32_1 = arith.constant 0 : i32
    return %c0_i32, %c0_i32_0 : i32, i32
  }
  func.func @transform_3(%arg0: i32) -> (i32, i32) {
    %c0_i32 = arith.constant 0 : i32
    %c0_i32_0 = arith.constant 0 : i32
    %c0_i32_1 = arith.constant 0 : i32
    return %c0_i32, %c0_i32_0 : i32, i32
  }
  func.func @transform_4(%arg0: i32) -> (i32, i32) {
    %c0_i32 = arith.constant 0 : i32
    %c0_i32_0 = arith.constant 0 : i32
    %c0_i32_1 = arith.constant 0 : i32
    return %c0_i32, %c0_i32_0 : i32, i32
  }
  func.func @transform_5(%arg0: i32) -> (i32, i32) {
    %c0_i32 = arith.constant 0 : i32
    %c0_i32_0 = arith.constant 0 : i32
    return %arg0, %c0_i32 : i32, i32
  }
}

</mosaic_0001>

<bundles_post_ra>
// kernel: conv_and_fc_quan_forward.3
= control target key start
LH: loop header
LB: loop body
LE: loop exit
PB: predicated region body
PF: predicated region fallthrough
CT: control target
= control target key end

     0   :  { %vm211_vm0 = vcmask 1043456   ;;  %vm212_vm1 = vcmask 1044480   ;;  %vm156_vm2 = vcmask 203776   ;;  %v2267_v1 = vmov 65535   ;;  %s3091_s1 = inlined_call_operand.vmem [shape: bf16[25,20], index: 1, kind: input, shape index: {}]   ;;  %s3092_s0 = inlined_call_operand.vmem [shape: bf16[4,288,25], index: 0, kind: input, shape index: {}]   ;;  %s3093_s2 = inlined_call_operand.vmem [shape: f32[1,20], index: 2, kind: input, shape index: {}]   ;;  %s3094_s3 = inlined_call_operand.vmem [shape: f32[288,20], index: 3, kind: output, shape index: {}]  }
   0x1   :  { %v2193_v0 = vld [vmem:[%s3091_s1] sm:$0xff]   ;;  %v213_v2 = vsel %vm211_vm0, 4294967295, %v2267_v1  ;;  %v2194_v3 = vld [vmem:[%s3091_s1 + $0x8] sm:$0x1f]   ;;  %v2196_v7 = vld [vmem:[%s3092_s0 + $0x90] sm:$0xff]   ;;  %vm1656_vm3 = vcmask 162816  }
   0x2   :  { %2032 = vmatprep.subr.bf16.mxu0 %v2193_v0  ;;  %2072 = vmatprep.subr.bf16.mxu1 %v2193_v0  ;;  %v214_v4 = vsel %vm212_vm1, %v213_v2, 0  ;;  %v2195_v5 = vld [vmem:[%s3092_s0] sm:$0xff]   ;;  %v2197_v8 = vld [vmem:[%s3092_s0 + $0x8] sm:$0xff]   ;;  %v2198_v9 = vld [vmem:[%s3092_s0 + $0x98] sm:$0xff]  }
   0x3   :  { %2033 = vmatpush3.bf16.msra.mxu0 %v2193_v0  ;;  %2073 = vmatpush3.bf16.msra.mxu1 %v2193_v0  ;;  %v216_v6 = vand.u32 %v2194_v3, %v214_v4  ;;  %v2199_v10 = vld [vmem:[%s3092_s0 + $0x10] sm:$0xff]   ;;  %v2200_v11 = vld [vmem:[%s3092_s0 + $0xa0] sm:$0xff]   ;;  %v2201_v12 = vld [vmem:[%s3092_s0 + $0x18] sm:$0xff]  }
   0x4   :  { %2036 = vmatprep.mubr.msk.bf16.mxu0 %vm156_vm2, %v2195_v5  ;;  %2076 = vmatprep.mubr.msk.bf16.mxu1 %vm156_vm2, %v2196_v7  ;;  %v2202_v13 = vld [vmem:[%s3092_s0 + $0xa8] sm:$0xff]   ;;  %v2203_v14 = vld [vmem:[%s3092_s0 + $0x20] sm:$0xff]   ;;  %v2204_v15 = vld [vmem:[%s3092_s0 + $0xb0] sm:$0xff]  }
   0x5   :  { %2034 = vmatprep.subr.bf16.mxu0 %v216_v6  ;;  %2074 = vmatprep.subr.bf16.mxu1 %v216_v6  ;;  %v2205_v16 = vld [vmem:[%s3092_s0 + $0x28] sm:$0xff]   ;;  %v2206_v17 = vld [vmem:[%s3092_s0 + $0xb8] sm:$0xff]   ;;  %v2207_v18 = vld [vmem:[%s3092_s0 + $0x30] sm:$0xff]  }
   0x6   :  { %v2208_v19 = vld [vmem:[%s3092_s0 + $0xc0] sm:$0xff]   ;;  %v2209_v20 = vld [vmem:[%s3092_s0 + $0x38] sm:$0xff]   ;;  %v2210_v21 = vld [vmem:[%s3092_s0 + $0xc8] sm:$0xff]  }
   0x7   :  { %2035 = vmatpush3.bf16.msra.mxu0 %v216_v6  ;;  %2075 = vmatpush3.bf16.msra.mxu1 %v216_v6  ;;  %v2211_v22 = vld [vmem:[%s3092_s0 + $0x40] sm:$0xff]   ;;  %v2212_v23 = vld [vmem:[%s3092_s0 + $0xd0] sm:$0xff]   ;;  %v2213_v24 = vld [vmem:[%s3092_s0 + $0x48] sm:$0xff]  }
   0x8   :  { %2112 = vmatprep.subr.bf16.mxu0 %v2193_v0  ;;  %2152 = vmatprep.subr.bf16.mxu1 %v2193_v0  ;;  %v2214_v25 = vld [vmem:[%s3092_s0 + $0xd8] sm:$0xff]   ;;  %v2215_v26 = vld [vmem:[%s3092_s0 + $0x50] sm:$0xff]   ;;  %v2216_v27 = vld [vmem:[%s3092_s0 + $0xe0] sm:$0xff]  }
   0x9   :  { %v2217_v28 = vld [vmem:[%s3092_s0 + $0x58] sm:$0xff]   ;;  %v2218_v29 = vld [vmem:[%s3092_s0 + $0xe8] sm:$0xff]   ;;  %v2219_v30 = vld [vmem:[%s3092_s0 + $0x60] sm:$0xff]  }
   0xa   :  { %2037 = vmatmul.mubr.msk.bf16.vlgmr.msra.gmra.mrb[0].mxu0 %vm156_vm2, %v2197_v8  ;;  %2077 = vmatmul.mubr.msk.bf16.vlgmr.msra.gmra.mrb[0].mxu1 %vm156_vm2, %v2198_v9  ;;  %v2220_v31 = vld [vmem:[%s3092_s0 + $0xf0] sm:$0xff]   ;;  %v2221_v32 = vld [vmem:[%s3092_s0 + $0x68] sm:$0xff]   ;;  %v2222_v33 = vld [vmem:[%s3092_s0 + $0xf8] sm:$0xff]  }
   0xb   :  { %2113 = vmatpush3.bf16.msra.mxu0 %v2193_v0  ;;  %2153 = vmatpush3.bf16.msra.mxu1 %v2193_v0  ;;  %v2223_v34 = vld [vmem:[%s3092_s0 + $0x70] sm:$0xff]   ;;  %v2224_v35 = vld [vmem:[%s3092_s0 + $0x100] sm:$0xff]   ;;  %v2225_v36 = vld [vmem:[%s3092_s0 + $0x78] sm:$0xff]  }
   0xc   :  { %2040 = vmatprep.mubr.msk.bf16.mxu0 %vm156_vm2, %v2199_v10  ;;  %2080 = vmatprep.mubr.msk.bf16.mxu1 %vm156_vm2, %v2200_v11  ;;  %v2226_v37 = vld [vmem:[%s3092_s0 + $0x108] sm:$0xff]   ;;  %v2227_v38 = vld [vmem:[%s3092_s0 + $0x80] sm:$0xff]   ;;  %v2228_v39 = vld [vmem:[%s3092_s0 + $0x110] sm:$0xff]  }
   0xd   :  { %2114 = vmatprep.subr.bf16.mxu0 %v216_v6  ;;  %2154 = vmatprep.subr.bf16.mxu1 %v216_v6  ;;  %v2229_v40 = vld [vmem:[%s3092_s0 + $0x88] sm:$0xff]   ;;  %v2230_v41 = vld [vmem:[%s3092_s0 + $0x118] sm:$0xff]   ;;  %v2231_v42 = vld [vmem:[%s3092_s0 + $0x120] sm:$0xff]  }
   0xe   :  { %v2232_v43 = vld [vmem:[%s3092_s0 + $0x1b0] sm:$0xff]   ;;  %v2233_v44 = vld [vmem:[%s3092_s0 + $0x128] sm:$0xff]   ;;  %v2234_v45 = vld [vmem:[%s3092_s0 + $0x1b8] sm:$0xff]  }
   0xf   :  { %2115 = vmatpush3.bf16.msra.mxu0 %v216_v6  ;;  %2155 = vmatpush3.bf16.msra.mxu1 %v216_v6  ;;  %v2235_v46 = vld [vmem:[%s3092_s0 + $0x130] sm:$0xff]   ;;  %v2236_v47 = vld [vmem:[%s3092_s0 + $0x1c0] sm:$0xff]   ;;  %v2237_v48 = vld [vmem:[%s3092_s0 + $0x138] sm:$0xff]  }
  0x10   :  { %v2238_v49 = vld [vmem:[%s3092_s0 + $0x1c8] sm:$0xff]   ;;  %v2239_v50 = vld [vmem:[%s3092_s0 + $0x140] sm:$0xff]   ;;  %v2240_v51 = vld [vmem:[%s3092_s0 + $0x1d0] sm:$0xff]  }
  0x11   :  { %v2241_v52 = vld [vmem:[%s3092_s0 + $0x148] sm:$0xff]   ;;  %v2242_v53 = vld [vmem:[%s3092_s0 + $0x1d8] sm:$0xff]   ;;  %v2243_v54 = vld [vmem:[%s3092_s0 + $0x150] sm:$0xff]  }
  0x12   :  { %2041 = vmatmul.mubr.msk.bf16.gmra.mrb[4].mxu0 %vm156_vm2, %v2201_v12  ;;  %2081 = vmatmul.mubr.msk.bf16.gmra.mrb[4].mxu1 %vm156_vm2, %v2202_v13  ;;  %v2244_v55 = vld [vmem:[%s3092_s0 + $0x1e0] sm:$0xff]   ;;  %v2245_v56 = vld [vmem:[%s3092_s0 + $0x158] sm:$0xff]   ;;  %v2246_v57 = vld [vmem:[%s3092_s0 + $0x1e8] sm:$0xff]  }
  0x13   :  { %2044 = vmatprep.mubr.msk.bf16.mxu0 %vm156_vm2, %v2203_v14  ;;  %2084 = vmatprep.mubr.msk.bf16.mxu1 %vm156_vm2, %v2204_v15  ;;  %v2247_v58 = vld [vmem:[%s3092_s0 + $0x160] sm:$0xff]   ;;  %v2248_v59 = vld [vmem:[%s3092_s0 + $0x1f0] sm:$0xff]   ;;  %v2249_v60 = vld [vmem:[%s3092_s0 + $0x168] sm:$0xff]  }
  0x14   :  { %v2250_v61 = vld [vmem:[%s3092_s0 + $0x1f8] sm:$0xff]   ;;  %v2251_v62 = vld [vmem:[%s3092_s0 + $0x170] sm:$0xff]   ;;  %v2252_v63 = vld [vmem:[%s3092_s0 + $0x200] sm:$0xff]  }
  0x15   :  { %v2253_v0 = vld [vmem:[%s3092_s0 + $0x178] sm:$0xff]   ;;  %v2254_v1 = vld [vmem:[%s3092_s0 + $0x208] sm:$0xff]   ;;  %v2255_v2 = vld [vmem:[%s3092_s0 + $0x180] sm:$0xff]  }
  0x16   :  { %v2256_v3 = vld [vmem:[%s3092_s0 + $0x210] sm:$0xff]   ;;  %v2257_v4 = vld [vmem:[%s3092_s0 + $0x188] sm:$0xff]   ;;  %v2258_v5 = vld [vmem:[%s3092_s0 + $0x218] sm:$0xff]  }
  0x17   :  { %v2259_v6 = vld [vmem:[%s3092_s0 + $0x190] sm:$0xff]   ;;  %v2260_v7 = vld [vmem:[%s3092_s0 + $0x220] sm:$0xff]   ;;  %v2261_v8 = vld [vmem:[%s3092_s0 + $0x198] sm:$0xff]  }
  0x18   :  { %v2262_v9 = vld [vmem:[%s3092_s0 + $0x228] sm:$0xff]   ;;  %v2263_v10 = vld [vmem:[%s3092_s0 + $0x1a0] sm:$0xff]   ;;  %v2264_v11 = vld [vmem:[%s3092_s0 + $0x230] sm:$0xff]  }
  0x19   :  { %v2265_v12 = vld [vmem:[%s3092_s0 + $0x1a8] sm:$0xff]   ;;  %v2266_v13 = vld [vmem:[%s3092_s0 + $0x238] sm:$0xff]  }
  0x1a   :  { %2045 = vmatmul.mubr.msk.bf16.gmra.mrb[8].mxu0 %vm156_vm2, %v2205_v16  ;;  %2085 = vmatmul.mubr.msk.bf16.gmra.mrb[8].mxu1 %vm156_vm2, %v2206_v17 }
  0x1b   :  { %2048 = vmatprep.mubr.msk.bf16.mxu0 %vm156_vm2, %v2207_v18  ;;  %2088 = vmatprep.mubr.msk.bf16.mxu1 %vm156_vm2, %v2208_v19 }
  0x22   :  { %2049 = vmatmul.mubr.msk.bf16.gmra.mrb[12].mxu0 %vm156_vm2, %v2209_v20  ;;  %2089 = vmatmul.mubr.msk.bf16.gmra.mrb[12].mxu1 %vm156_vm2, %v2210_v21 }
  0x23   :  { %2052 = vmatprep.mubr.msk.bf16.mxu0 %vm156_vm2, %v2211_v22  ;;  %2092 = vmatprep.mubr.msk.bf16.mxu1 %vm156_vm2, %v2212_v23 }
  0x2a   :  { %2053 = vmatmul.mubr.msk.bf16.gmra.mrb[16].mxu0 %vm156_vm2, %v2213_v24  ;;  %2093 = vmatmul.mubr.msk.bf16.gmra.mrb[16].mxu1 %vm156_vm2, %v2214_v25 }
  0x2b   :  { %2056 = vmatprep.mubr.msk.bf16.mxu0 %vm156_vm2, %v2215_v26  ;;  %2096 = vmatprep.mubr.msk.bf16.mxu1 %vm156_vm2, %v2216_v27 }
  0x32   :  { %2057 = vmatmul.mubr.msk.bf16.gmra.mrb[20].mxu0 %vm156_vm2, %v2217_v28  ;;  %2097 = vmatmul.mubr.msk.bf16.gmra.mrb[20].mxu1 %vm156_vm2, %v2218_v29 }
  0x33   :  { %2060 = vmatprep.mubr.msk.bf16.mxu0 %vm156_vm2, %v2219_v30  ;;  %2100 = vmatprep.mubr.msk.bf16.mxu1 %vm156_vm2, %v2220_v31 }
  0x3a   :  { %2061 = vmatmul.mubr.msk.bf16.gmra.mrb[24].mxu0 %vm156_vm2, %v2221_v32  ;;  %2101 = vmatmul.mubr.msk.bf16.gmra.mrb[24].mxu1 %vm156_vm2, %v2222_v33 }
  0x3b   :  { %2064 = vmatprep.mubr.msk.bf16.mxu0 %vm156_vm2, %v2223_v34  ;;  %2104 = vmatprep.mubr.msk.bf16.mxu1 %vm156_vm2, %v2224_v35 }
  0x42   :  { %2065 = vmatmul.mubr.msk.bf16.gmra.mrb[28].mxu0 %vm156_vm2, %v2225_v36  ;;  %2105 = vmatmul.mubr.msk.bf16.gmra.mrb[28].mxu1 %vm156_vm2, %v2226_v37 }
  0x43   :  { %2068 = vmatprep.mubr.msk.bf16.mxu0 %vm156_vm2, %v2227_v38  ;;  %2108 = vmatprep.mubr.msk.bf16.mxu1 %vm156_vm2, %v2228_v39 }
  0x4a   :  { %2069 = vmatmul.mubr.msk.bf16.gmra.mrb[32].mxu0 %vm156_vm2, %v2229_v40  ;;  %2109 = vmatmul.mubr.msk.bf16.gmra.mrb[32].mxu1 %vm156_vm2, %v2230_v41 }
  0x4b   :  { %2116 = vmatprep.mubr.msk.bf16.mxu0 %vm156_vm2, %v2231_v42  ;;  %2156 = vmatprep.mubr.msk.bf16.mxu1 %vm156_vm2, %v2232_v43 }
  0x52   :  { %2117 = vmatmul.mubr.msk.bf16.vlgmr.msra.gmra.mrb[36].mxu0 %vm156_vm2, %v2233_v44  ;;  %2157 = vmatmul.mubr.msk.bf16.vlgmr.msra.gmra.mrb[36].mxu1 %vm156_vm2, %v2234_v45 }
  0x53   :  { %2120 = vmatprep.mubr.msk.bf16.mxu0 %vm156_vm2, %v2235_v46  ;;  %2160 = vmatprep.mubr.msk.bf16.mxu1 %vm156_vm2, %v2236_v47 }
  0x5a   :  { %2121 = vmatmul.mubr.msk.bf16.gmra.mrb[40].mxu0 %vm156_vm2, %v2237_v48  ;;  %2161 = vmatmul.mubr.msk.bf16.gmra.mrb[40].mxu1 %vm156_vm2, %v2238_v49 }
  0x5b   :  { %2124 = vmatprep.mubr.msk.bf16.mxu0 %vm156_vm2, %v2239_v50  ;;  %2164 = vmatprep.mubr.msk.bf16.mxu1 %vm156_vm2, %v2240_v51 }
  0x62   :  { %2125 = vmatmul.mubr.msk.bf16.gmra.mrb[44].mxu0 %vm156_vm2, %v2241_v52  ;;  %2165 = vmatmul.mubr.msk.bf16.gmra.mrb[44].mxu1 %vm156_vm2, %v2242_v53 }
  0x63   :  { %2128 = vmatprep.mubr.msk.bf16.mxu0 %vm156_vm2, %v2243_v54  ;;  %2168 = vmatprep.mubr.msk.bf16.mxu1 %vm156_vm2, %v2244_v55 }
  0x6a   :  { %2129 = vmatmul.mubr.msk.bf16.gmra.mrb[48].mxu0 %vm156_vm2, %v2245_v56  ;;  %2169 = vmatmul.mubr.msk.bf16.gmra.mrb[48].mxu1 %vm156_vm2, %v2246_v57 }
  0x6b   :  { %2132 = vmatprep.mubr.msk.bf16.mxu0 %vm156_vm2, %v2247_v58  ;;  %2172 = vmatprep.mubr.msk.bf16.mxu1 %vm156_vm2, %v2248_v59 }
  0x72   :  { %2133 = vmatmul.mubr.msk.bf16.gmra.mrb[52].mxu0 %vm156_vm2, %v2249_v60  ;;  %2173 = vmatmul.mubr.msk.bf16.gmra.mrb[52].mxu1 %vm156_vm2, %v2250_v61 }
  0x73   :  { %2136 = vmatprep.mubr.msk.bf16.mxu0 %vm156_vm2, %v2251_v62  ;;  %2176 = vmatprep.mubr.msk.bf16.mxu1 %vm156_vm2, %v2252_v63 }
  0x7a   :  { %2137 = vmatmul.mubr.msk.bf16.gmra.mrb[56].mxu0 %vm156_vm2, %v2253_v0  ;;  %2177 = vmatmul.mubr.msk.bf16.gmra.mrb[56].mxu1 %vm156_vm2, %v2254_v1 }
  0x7b   :  { %2140 = vmatprep.mubr.msk.bf16.mxu0 %vm156_vm2, %v2255_v2  ;;  %2180 = vmatprep.mubr.msk.bf16.mxu1 %vm156_vm2, %v2256_v3 }
  0x82   :  { %2141 = vmatmul.mubr.msk.bf16.gmra.mrb[60].mxu0 %vm156_vm2, %v2257_v4  ;;  %2181 = vmatmul.mubr.msk.bf16.gmra.mrb[60].mxu1 %vm156_vm2, %v2258_v5 }
  0x83   :  { %2144 = vmatprep.mubr.msk.bf16.mxu0 %vm156_vm2, %v2259_v6  ;;  %2184 = vmatprep.mubr.msk.bf16.mxu1 %vm156_vm2, %v2260_v7  ;;  %v2801_v6 = vld [vmem:[%s3093_s2] ss:$0 sm:$0xff] }
  0x8a   :  { %2145 = vmatmul.mubr.msk.bf16.gmra.mrb[64].mxu0 %vm156_vm2, %v2261_v8  ;;  %2185 = vmatmul.mubr.msk.bf16.gmra.mrb[64].mxu1 %vm156_vm2, %v2262_v9 }
  0x8b   :  { %2148 = vmatprep.mubr.msk.bf16.mxu0 %vm156_vm2, %v2263_v10  ;;  %2188 = vmatprep.mubr.msk.bf16.mxu1 %vm156_vm2, %v2264_v11 }
  0x92   :  { %2149 = vmatmul.mubr.msk.bf16.gmra.mrb[68].mxu0 %vm156_vm2, %v2265_v12  ;;  %2189 = vmatmul.mubr.msk.bf16.gmra.mrb[68].mxu1 %vm156_vm2, %v2266_v13 }
  0xdd   :  { %v2582_v14 = vpop.f32.mrb[0].mxu0  ;;  %v2584_v15 = vpop.f32.mrb[0].mxu1 }
  0xde   :  { %v2588_v17 = vpop.f32.mrb[1].mxu0  ;;  %v2590_v18 = vpop.f32.mrb[1].mxu1 }
  0xdf   :  { %v2594_v20 = vpop.f32.mrb[2].mxu0  ;;  %v2596_v21 = vpop.f32.mrb[2].mxu1 }
  0xe0   :  { %v2600_v23 = vpop.f32.mrb[3].mxu0  ;;  %v2602_v24 = vpop.f32.mrb[3].mxu1 }
  0xe5   :  { %v2606_v26 = vpop.f32.mrb[4].mxu0  ;;  %v2608_v27 = vpop.f32.mrb[4].mxu1 }
  0xe6   :  { %v2612_v29 = vpop.f32.mrb[5].mxu0  ;;  %v2614_v30 = vpop.f32.mrb[5].mxu1 }
  0xe7   :  { %v2618_v32 = vpop.f32.mrb[6].mxu0  ;;  %v2620_v33 = vpop.f32.mrb[6].mxu1 }
  0xe8   :  { %v2624_v35 = vpop.f32.mrb[7].mxu0  ;;  %v2626_v36 = vpop.f32.mrb[7].mxu1 }
  0xed   :  { %v2630_v38 = vpop.f32.mrb[8].mxu0  ;;  %v2632_v39 = vpop.f32.mrb[8].mxu1 }
  0xee   :  { %v2636_v41 = vpop.f32.mrb[9].mxu0  ;;  %v2638_v42 = vpop.f32.mrb[9].mxu1 }
  0xef   :  { %v2642_v44 = vpop.f32.mrb[10].mxu0  ;;  %v2644_v45 = vpop.f32.mrb[10].mxu1 }
  0xf0   :  { %v2648_v47 = vpop.f32.mrb[11].mxu0  ;;  %v2650_v48 = vpop.f32.mrb[11].mxu1 }
  0xf5   :  { %v2654_v50 = vpop.f32.mrb[12].mxu0  ;;  %v2656_v51 = vpop.f32.mrb[12].mxu1 }
  0xf6   :  { %v2660_v53 = vpop.f32.mrb[13].mxu0  ;;  %v2662_v54 = vpop.f32.mrb[13].mxu1 }
  0xf7   :  { %v2666_v56 = vpop.f32.mrb[14].mxu0  ;;  %v2668_v57 = vpop.f32.mrb[14].mxu1 }
  0xf8   :  { %v2672_v59 = vpop.f32.mrb[15].mxu0  ;;  %v2674_v60 = vpop.f32.mrb[15].mxu1 }
  0xfd   :  { %v2678_v62 = vpop.f32.mrb[16].mxu0  ;;  %v2680_v63 = vpop.f32.mrb[16].mxu1 }
  0xfe   :  { %v2684_v1 = vpop.f32.mrb[17].mxu0  ;;  %v2686_v2 = vpop.f32.mrb[17].mxu1 }
  0xff   :  { %v2690_v4 = vpop.f32.mrb[18].mxu0  ;;  %v2692_v5 = vpop.f32.mrb[18].mxu1 }
 0x100   :  { %v2696_v7 = vpop.f32.mrb[19].mxu0  ;;  %v2698_v8 = vpop.f32.mrb[19].mxu1 }
 0x105   :  { %v2702_v10 = vpop.f32.mrb[20].mxu0  ;;  %v2704_v11 = vpop.f32.mrb[20].mxu1 }
 0x106   :  { %v2708_v13 = vpop.f32.mrb[21].mxu0  ;;  %v2710_v3 = vpop.f32.mrb[21].mxu1 }
 0x107   :  { %v2714_v0 = vpop.f32.mrb[22].mxu0  ;;  %v2716_v61 = vpop.f32.mrb[22].mxu1 }
 0x108   :  { %v2720_v58 = vpop.f32.mrb[23].mxu0  ;;  %v2722_v55 = vpop.f32.mrb[23].mxu1 }
 0x109   :  { %3120 = vst [vmem:[#allocation2_spill] sm:$0xff] %v2722_v55  ;;  %v3147_v55 = vmax.f32 %v2594_v20, %v2596_v21 }
 0x10d   :  { %v2726_v52 = vpop.f32.mrb[24].mxu0  ;;  %v2728_v49 = vpop.f32.mrb[24].mxu1 }
 0x10e   :  { %3121 = vst [vmem:[#allocation3_spill] sm:$0xff] %v2726_v52  ;;  %3122 = vst [vmem:[#allocation4_spill] sm:$0xff] %v2728_v49  ;;  %v2732_v46 = vpop.f32.mrb[25].mxu0  ;;  %v2734_v43 = vpop.f32.mrb[25].mxu1 }
 0x10f   :  { %3123 = vst [vmem:[#allocation5_spill] sm:$0xff] %v2732_v46  ;;  %3124 = vst [vmem:[#allocation6_spill] sm:$0xff] %v2734_v43  ;;  %v2738_v40 = vpop.f32.mrb[26].mxu0  ;;  %v2740_v37 = vpop.f32.mrb[26].mxu1 }
 0x110   :  { %3125 = vst [vmem:[#allocation7_spill] sm:$0xff] %v2738_v40  ;;  %3126 = vst [vmem:[#allocation8_spill] sm:$0xff] %v2740_v37  ;;  %v2744_v34 = vpop.f32.mrb[27].mxu0  ;;  %v2746_v31 = vpop.f32.mrb[27].mxu1 }
 0x111   :  { %3127 = vst [vmem:[#allocation9_spill] sm:$0xff] %v2744_v34  ;;  %3128 = vst [vmem:[#allocation10_spill] sm:$0xff] %v2746_v31 }
 0x115   :  { %v2750_v28 = vpop.f32.mrb[28].mxu0  ;;  %v2752_v25 = vpop.f32.mrb[28].mxu1 }
 0x116   :  { %3129 = vst [vmem:[#allocation11_spill] sm:$0xff] %v2750_v28  ;;  %3130 = vst [vmem:[#allocation12_spill] sm:$0xff] %v2752_v25  ;;  %v2756_v22 = vpop.f32.mrb[29].mxu0  ;;  %v2758_v19 = vpop.f32.mrb[29].mxu1 }
 0x117   :  { %3131 = vst [vmem:[#allocation13_spill] sm:$0xff] %v2756_v22  ;;  %3132 = vst [vmem:[#allocation14_spill] sm:$0xff] %v2758_v19  ;;  %v2762_v16 = vpop.f32.mrb[30].mxu0  ;;  %v2764_v37 = vpop.f32.mrb[30].mxu1 }
 0x118   :  { %3133 = vst [vmem:[#allocation15_spill] sm:$0xff] %v2762_v16  ;;  %3134 = vst [vmem:[#allocation16_spill] sm:$0xff] %v2764_v37  ;;  %v2768_v31 = vpop.f32.mrb[31].mxu0  ;;  %v2770_v34 = vpop.f32.mrb[31].mxu1 }
 0x119   :  { %3135 = vst [vmem:[#allocation17_spill] sm:$0xff] %v2768_v31  ;;  %3136 = vst [vmem:[#allocation18_spill] sm:$0xff] %v2770_v34 }
 0x11d   :  { %v2774_v25 = vpop.f32.mrb[32].mxu0  ;;  %v2776_v28 = vpop.f32.mrb[32].mxu1 }
 0x11e   :  { %3137 = vst [vmem:[#allocation19_spill] sm:$0xff] %v2774_v25  ;;  %3138 = vst [vmem:[#allocation20_spill] sm:$0xff] %v2776_v28  ;;  %v2780_v19 = vpop.f32.mrb[33].mxu0  ;;  %v2782_v22 = vpop.f32.mrb[33].mxu1 }
 0x11f   :  { %3139 = vst [vmem:[#allocation21_spill] sm:$0xff] %v2780_v19  ;;  %3140 = vst [vmem:[#allocation22_spill] sm:$0xff] %v2782_v22  ;;  %v2786_v37 = vpop.f32.mrb[34].mxu0  ;;  %v2788_v16 = vpop.f32.mrb[34].mxu1 }
 0x120   :  { %3141 = vst [vmem:[#allocation23_spill] sm:$0xff] %v2786_v37  ;;  %3142 = vst [vmem:[#allocation24_spill] sm:$0xff] %v2788_v16  ;;  %v2792_v34 = vpop.f32.mrb[35].mxu0  ;;  %v2794_v31 = vpop.f32.mrb[35].mxu1  ;;  %v3145_v16 = vmax.f32 %v2582_v14, %v2584_v15  ;;  %v3148_v14 = vmax.f32 %v2600_v23, %v2602_v24 }
 0x121   :  { %3143 = vst [vmem:[#allocation25_spill] sm:$0xff] %v2792_v34  ;;  %3144 = vst [vmem:[#allocation26_spill] sm:$0xff] %v2794_v31 }
 0x125   :  { %v2118_v28 = vpop.f32.mrb[36].mxu0  ;;  %v2158_v25 = vpop.f32.mrb[36].mxu1 }
 0x126   :  { %v1507_v40 = vmax.f32 %v2118_v28, %v2158_v25  ;;  %v968_v43 = vpop.f32.mrb[37].mxu0  ;;  %v1326_v46 = vpop.f32.mrb[37].mxu1  ;;  %v3146_v25 = vmax.f32 %v2588_v17, %v2590_v18 }
 0x127   :  { %v1505_v22 = vmax.f32 %v968_v43, %v1326_v46  ;;  %v2119_v19 = vpop.f32.mrb[38].mxu0  ;;  %v2159_v9 = vpop.f32.mrb[38].mxu1 }
 0x128   :  { %v1543_v37 = vmax.f32 %v3145_v16, %v1507_v40  ;;  %v1508_v49 = vmax.f32 %v2119_v19, %v2159_v9  ;;  %v971_v52 = vpop.f32.mrb[39].mxu0  ;;  %v1329_v12 = vpop.f32.mrb[39].mxu1 }
 0x129   :  { %v1541_v28 = vmax.f32 %v3146_v25, %v1505_v22  ;;  %v1506_v31 = vmax.f32 %v971_v52, %v1329_v12  ;;  %v3149_v52 = vmax.f32 %v2606_v26, %v2608_v27 }
 0x12a   :  { %v1586_v34 = vadd.f32 %v2801_v6, %v1543_v37  ;;  %v1544_v43 = vmax.f32 %v3147_v55, %v1508_v49 }
 0x12b   :  { %v1584_v46 = vadd.f32 %v2801_v6, %v1541_v28  ;;  %v1542_v15 = vmax.f32 %v3148_v14, %v1506_v31  ;;  %v3150_v28 = vmax.f32 %v2612_v29, %v2614_v30 }
 0x12c   :  { %v1622_v16 = vmax.f32 %v1586_v34, 0.0  ;;  %v1587_v19 = vadd.f32 %v2801_v6, %v1544_v43 }
 0x12d   :  { %v1620_v40 = vmax.f32 %v1584_v46, 0.0  ;;  %v1585_v17 = vadd.f32 %v2801_v6, %v1542_v15  ;;  %v2122_v18 = vpop.f32.mrb[40].mxu0  ;;  %v2162_v22 = vpop.f32.mrb[40].mxu1  ;;  %v3151_v15 = vmax.f32 %v2618_v32, %v2620_v33 }
 0x12e   :  { %1659 = vst.msk [vmem:[%s3094_s3 + $0x10] sm:$0xff] %vm1656_vm3, %v1622_v16  ;;  %v1623_v20 = vmax.f32 %v1587_v19, 0.0  ;;  %v1511_v21 = vmax.f32 %v2122_v18, %v2162_v22  ;;  %v984_v37 = vpop.f32.mrb[41].mxu0  ;;  %v1342_v49 = vpop.f32.mrb[41].mxu1  ;;  %v3152_v16 = vmax.f32 %v2624_v35, %v2626_v36 }
 0x12f   :  { %1657 = vst.msk [vmem:[%s3094_s3] sm:$0xff] %vm1656_vm3, %v1620_v40  ;;  %v1621_v23 = vmax.f32 %v1585_v17, 0.0  ;;  %v1509_v24 = vmax.f32 %v984_v37, %v1342_v49  ;;  %v2123_v31 = vpop.f32.mrb[42].mxu0  ;;  %v2163_v34 = vpop.f32.mrb[42].mxu1 }
 0x130   :  { %1660 = vst.msk [vmem:[%s3094_s3 + $0x18] sm:$0xff] %vm1656_vm3, %v1623_v20  ;;  %v1547_v55 = vmax.f32 %v3149_v52, %v1511_v21  ;;  %v1512_v9 = vmax.f32 %v2123_v31, %v2163_v34  ;;  %v987_v12 = vpop.f32.mrb[43].mxu0  ;;  %v1345_v25 = vpop.f32.mrb[43].mxu1 }
 0x131   :  { %1658 = vst.msk [vmem:[%s3094_s3 + $0x8] sm:$0xff] %vm1656_vm3, %v1621_v23  ;;  %v1545_v43 = vmax.f32 %v3150_v28, %v1509_v24  ;;  %v1510_v46 = vmax.f32 %v987_v12, %v1345_v25  ;;  %v3153_v23 = vmax.f32 %v2630_v38, %v2632_v39  ;;  %v3155_v28 = vmax.f32 %v2642_v44, %v2644_v45 }
 0x132   :  { %v1590_v14 = vadd.f32 %v2801_v6, %v1547_v55  ;;  %v1548_v26 = vmax.f32 %v3151_v15, %v1512_v9  ;;  %v3154_v55 = vmax.f32 %v2636_v41, %v2638_v42 }
 0x133   :  { %v1588_v27 = vadd.f32 %v2801_v6, %v1545_v43  ;;  %v1546_v19 = vmax.f32 %v3152_v16, %v1510_v46  ;;  %v3156_v43 = vmax.f32 %v2648_v47, %v2650_v48 }
 0x134   :  { %v1626_v40 = vmax.f32 %v1590_v14, 0.0  ;;  %v1591_v17 = vadd.f32 %v2801_v6, %v1548_v26 }
 0x135   :  { %v1624_v18 = vmax.f32 %v1588_v27, 0.0  ;;  %v1589_v29 = vadd.f32 %v2801_v6, %v1546_v19  ;;  %v2126_v30 = vpop.f32.mrb[44].mxu0  ;;  %v2166_v22 = vpop.f32.mrb[44].mxu1 }
 0x136   :  { %1663 = vst.msk [vmem:[%s3094_s3 + $0x30] sm:$0xff] %vm1656_vm3, %v1626_v40  ;;  %v1627_v32 = vmax.f32 %v1591_v17, 0.0  ;;  %v1515_v33 = vmax.f32 %v2126_v30, %v2166_v22  ;;  %v1000_v20 = vpop.f32.mrb[45].mxu0  ;;  %v1358_v21 = vpop.f32.mrb[45].mxu1 }
 0x137   :  { %1661 = vst.msk [vmem:[%s3094_s3 + $0x20] sm:$0xff] %vm1656_vm3, %v1624_v18  ;;  %v1625_v35 = vmax.f32 %v1589_v29, 0.0  ;;  %v1513_v36 = vmax.f32 %v1000_v20, %v1358_v21  ;;  %v2127_v37 = vpop.f32.mrb[46].mxu0  ;;  %v2167_v49 = vpop.f32.mrb[46].mxu1  ;;  %v3157_v18 = vmax.f32 %v2654_v50, %v2656_v51 }
 0x138   :  { %1664 = vst.msk [vmem:[%s3094_s3 + $0x38] sm:$0xff] %vm1656_vm3, %v1627_v32  ;;  %v1551_v24 = vmax.f32 %v3153_v23, %v1515_v33  ;;  %v1516_v31 = vmax.f32 %v2127_v37, %v2167_v49  ;;  %v1003_v34 = vpop.f32.mrb[47].mxu0  ;;  %v1361_v52 = vpop.f32.mrb[47].mxu1  ;;  %v3158_v33 = vmax.f32 %v2660_v53, %v2662_v54  ;;  %v3160_v37 = vmax.f32 %v2672_v59, %v2674_v60 }
 0x139   :  { %1662 = vst.msk [vmem:[%s3094_s3 + $0x28] sm:$0xff] %vm1656_vm3, %v1625_v35  ;;  %v1549_v9 = vmax.f32 %v3154_v55, %v1513_v36  ;;  %v1514_v12 = vmax.f32 %v1003_v34, %v1361_v52  ;;  %v3159_v36 = vmax.f32 %v2666_v56, %v2668_v57 }
 0x13a   :  { %v1594_v25 = vadd.f32 %v2801_v6, %v1551_v24  ;;  %v1552_v38 = vmax.f32 %v3155_v28, %v1516_v31 }
 0x13b   :  { %v1592_v39 = vadd.f32 %v2801_v6, %v1549_v9  ;;  %v1550_v46 = vmax.f32 %v3156_v43, %v1514_v12 }
 0x13c   :  { %v1630_v14 = vmax.f32 %v1594_v25, 0.0  ;;  %v1595_v15 = vadd.f32 %v2801_v6, %v1552_v38  ;;  %v3161_v25 = vmax.f32 %v2678_v62, %v2680_v63 }
 0x13d   :  { %v1628_v26 = vmax.f32 %v1592_v39, 0.0  ;;  %v1593_v41 = vadd.f32 %v2801_v6, %v1550_v46  ;;  %v2130_v42 = vpop.f32.mrb[48].mxu0  ;;  %v2170_v27 = vpop.f32.mrb[48].mxu1  ;;  %v3162_v46 = vmax.f32 %v2684_v1, %v2686_v2 }
 0x13e   :  { %1667 = vst.msk [vmem:[%s3094_s3 + $0x50] sm:$0xff] %vm1656_vm3, %v1630_v14  ;;  %v1631_v44 = vmax.f32 %v1595_v15, 0.0  ;;  %v1519_v45 = vmax.f32 %v2130_v42, %v2170_v27  ;;  %v1016_v16 = vpop.f32.mrb[49].mxu0  ;;  %v1374_v19 = vpop.f32.mrb[49].mxu1  ;;  %v3164_v42 = vmax.f32 %v2696_v7, %v2698_v8 }
 0x13f   :  { %1665 = vst.msk [vmem:[%s3094_s3 + $0x40] sm:$0xff] %vm1656_vm3, %v1628_v26  ;;  %v1629_v47 = vmax.f32 %v1593_v41, 0.0  ;;  %v1517_v48 = vmax.f32 %v1016_v16, %v1374_v19  ;;  %v2131_v40 = vpop.f32.mrb[50].mxu0  ;;  %v2171_v17 = vpop.f32.mrb[50].mxu1  ;;  %v3163_v41 = vmax.f32 %v2690_v4, %v2692_v5 }
 0x140   :  { %1668 = vst.msk [vmem:[%s3094_s3 + $0x58] sm:$0xff] %vm1656_vm3, %v1631_v44  ;;  %v1555_v29 = vmax.f32 %v3157_v18, %v1519_v45  ;;  %v1520_v30 = vmax.f32 %v2131_v40, %v2171_v17  ;;  %v1019_v22 = vpop.f32.mrb[51].mxu0  ;;  %v1377_v32 = vpop.f32.mrb[51].mxu1  ;;  %v3165_v18 = vmax.f32 %v2702_v10, %v2704_v11 }
 0x141   :  { %1666 = vst.msk [vmem:[%s3094_s3 + $0x48] sm:$0xff] %vm1656_vm3, %v1629_v47  ;;  %v1553_v20 = vmax.f32 %v3158_v33, %v1517_v48  ;;  %v1518_v21 = vmax.f32 %v1019_v22, %v1377_v32  ;;  %v3166_v33 = vmax.f32 %v2708_v13, %v2710_v3 }
 0x142   :  { %v1598_v35 = vadd.f32 %v2801_v6, %v1555_v29  ;;  %v1556_v50 = vmax.f32 %v3159_v36, %v1520_v30  ;;  %v3167_v36 = vmax.f32 %v2714_v0, %v2716_v61 }
 0x143   :  { %v1596_v51 = vadd.f32 %v2801_v6, %v1553_v20  ;;  %v1554_v49 = vmax.f32 %v3160_v37, %v1518_v21 }
 0x144   :  { %v1634_v23 = vmax.f32 %v1598_v35, 0.0  ;;  %v1599_v24 = vadd.f32 %v2801_v6, %v1556_v50  ;;  %v3168_v50 = vld [vmem:[#allocation2_spill] sm:$0xff] }
 0x145   :  { %v1632_v31 = vmax.f32 %v1596_v51, 0.0  ;;  %v1597_v53 = vadd.f32 %v2801_v6, %v1554_v49  ;;  %v2134_v54 = vpop.f32.mrb[52].mxu0  ;;  %v2174_v34 = vpop.f32.mrb[52].mxu1  ;;  %v3169_v51 = vmax.f32 %v2720_v58, %v3168_v50 }
 0x146   :  { %1671 = vst.msk [vmem:[%s3094_s3 + $0x70] sm:$0xff] %vm1656_vm3, %v1634_v23  ;;  %v1635_v56 = vmax.f32 %v1599_v24, 0.0  ;;  %v1523_v57 = vmax.f32 %v2134_v54, %v2174_v34  ;;  %v1032_v52 = vpop.f32.mrb[53].mxu0  ;;  %v1390_v55 = vpop.f32.mrb[53].mxu1 }
 0x147   :  { %1669 = vst.msk [vmem:[%s3094_s3 + $0x60] sm:$0xff] %vm1656_vm3, %v1632_v31  ;;  %v1633_v59 = vmax.f32 %v1597_v53, 0.0  ;;  %v1521_v60 = vmax.f32 %v1032_v52, %v1390_v55  ;;  %v2135_v9 = vpop.f32.mrb[54].mxu0  ;;  %v2175_v12 = vpop.f32.mrb[54].mxu1  ;;  %v3170_v52 = vld [vmem:[#allocation3_spill] sm:$0xff]  ;;  %v3171_v55 = vld [vmem:[#allocation4_spill] sm:$0xff] }
 0x148   :  { %1672 = vst.msk [vmem:[%s3094_s3 + $0x78] sm:$0xff] %vm1656_vm3, %v1635_v56  ;;  %v1559_v28 = vmax.f32 %v3161_v25, %v1523_v57  ;;  %v1524_v38 = vmax.f32 %v2135_v9, %v2175_v12  ;;  %v1035_v39 = vpop.f32.mrb[55].mxu0  ;;  %v1393_v43 = vpop.f32.mrb[55].mxu1 }
 0x149   :  { %1670 = vst.msk [vmem:[%s3094_s3 + $0x68] sm:$0xff] %vm1656_vm3, %v1633_v59  ;;  %v1557_v14 = vmax.f32 %v3162_v46, %v1521_v60  ;;  %v1522_v15 = vmax.f32 %v1035_v39, %v1393_v43  ;;  %v3172_v59 = vmax.f32 %v3170_v52, %v3171_v55 }
 0x14a   :  { %v1602_v26 = vadd.f32 %v2801_v6, %v1559_v28  ;;  %v1560_v62 = vmax.f32 %v3163_v41, %v1524_v38  ;;  %v3173_v28 = vld [vmem:[#allocation5_spill] sm:$0xff]  ;;  %v3174_v38 = vld [vmem:[#allocation6_spill] sm:$0xff] }
 0x14b   :  { %v1600_v63 = vadd.f32 %v2801_v6, %v1557_v14  ;;  %v1558_v27 = vmax.f32 %v3164_v42, %v1522_v15  ;;  %v3175_v39 = vmax.f32 %v3173_v28, %v3174_v38  ;;  %v3176_v15 = vld [vmem:[#allocation7_spill] sm:$0xff]  ;;  %v3179_v42 = vld [vmem:[#allocation9_spill] sm:$0xff] }
 0x14c   :  { %v1638_v44 = vmax.f32 %v1602_v26, 0.0  ;;  %v1603_v45 = vadd.f32 %v2801_v6, %v1560_v62  ;;  %v3177_v26 = vld [vmem:[#allocation8_spill] sm:$0xff] }
 0x14d   :  { %v1636_v16 = vmax.f32 %v1600_v63, 0.0  ;;  %v1601_v1 = vadd.f32 %v2801_v6, %v1558_v27  ;;  %v2138_v2 = vpop.f32.mrb[56].mxu0  ;;  %v2178_v19 = vpop.f32.mrb[56].mxu1  ;;  %v3178_v41 = vmax.f32 %v3176_v15, %v3177_v26  ;;  %v3180_v27 = vld [vmem:[#allocation10_spill] sm:$0xff] }
 0x14e   :  { %1675 = vst.msk [vmem:[%s3094_s3 + $0x90] sm:$0xff] %vm1656_vm3, %v1638_v44  ;;  %v1639_v4 = vmax.f32 %v1603_v45, 0.0  ;;  %v1527_v5 = vmax.f32 %v2138_v2, %v2178_v19  ;;  %v1048_v47 = vpop.f32.mrb[57].mxu0  ;;  %v1406_v48 = vpop.f32.mrb[57].mxu1  ;;  %v3181_v44 = vmax.f32 %v3179_v42, %v3180_v27 }
 0x14f   :  { %1673 = vst.msk [vmem:[%s3094_s3 + $0x80] sm:$0xff] %vm1656_vm3, %v1636_v16  ;;  %v1637_v7 = vmax.f32 %v1601_v1, 0.0  ;;  %v1525_v8 = vmax.f32 %v1048_v47, %v1406_v48  ;;  %v2139_v40 = vpop.f32.mrb[58].mxu0  ;;  %v2179_v17 = vpop.f32.mrb[58].mxu1 }
 0x150   :  { %1676 = vst.msk [vmem:[%s3094_s3 + $0x98] sm:$0xff] %vm1656_vm3, %v1639_v4  ;;  %v1563_v29 = vmax.f32 %v3165_v18, %v1527_v5  ;;  %v1528_v30 = vmax.f32 %v2139_v40, %v2179_v17  ;;  %v1051_v22 = vpop.f32.mrb[59].mxu0  ;;  %v1409_v32 = vpop.f32.mrb[59].mxu1 }
 0x151   :  { %1674 = vst.msk [vmem:[%s3094_s3 + $0x88] sm:$0xff] %vm1656_vm3, %v1637_v7  ;;  %v1561_v20 = vmax.f32 %v3166_v33, %v1525_v8  ;;  %v1526_v21 = vmax.f32 %v1051_v22, %v1409_v32  ;;  %v3183_v22 = vld [vmem:[#allocation12_spill] sm:$0xff] }
 0x152   :  { %v1606_v35 = vadd.f32 %v2801_v6, %v1563_v29  ;;  %v1564_v10 = vmax.f32 %v3167_v36, %v1528_v30  ;;  %v3182_v30 = vld [vmem:[#allocation11_spill] sm:$0xff]  ;;  %v3185_v36 = vld [vmem:[#allocation13_spill] sm:$0xff] }
 0x153   :  { %v1604_v11 = vadd.f32 %v2801_v6, %v1561_v20  ;;  %v1562_v37 = vmax.f32 %v3169_v51, %v1526_v21  ;;  %v3184_v32 = vmax.f32 %v3182_v30, %v3183_v22 }
 0x154   :  { %v1642_v49 = vmax.f32 %v1606_v35, 0.0  ;;  %v1607_v23 = vadd.f32 %v2801_v6, %v1564_v10  ;;  %v3186_v10 = vld [vmem:[#allocation14_spill] sm:$0xff] }
 0x155   :  { %v1640_v24 = vmax.f32 %v1604_v11, 0.0  ;;  %v1605_v3 = vadd.f32 %v2801_v6, %v1562_v37  ;;  %v2142_v13 = vpop.f32.mrb[60].mxu0  ;;  %v2182_v31 = vpop.f32.mrb[60].mxu1  ;;  %v3187_v11 = vmax.f32 %v3185_v36, %v3186_v10 }
 0x156   :  { %1679 = vst.msk [vmem:[%s3094_s3 + $0xb0] sm:$0xff] %vm1656_vm3, %v1642_v49  ;;  %v1643_v61 = vmax.f32 %v1607_v23, 0.0  ;;  %v1531_v0 = vmax.f32 %v2142_v13, %v2182_v31  ;;  %v1064_v53 = vpop.f32.mrb[61].mxu0  ;;  %v1422_v54 = vpop.f32.mrb[61].mxu1  ;;  %v3188_v49 = vld [vmem:[#allocation15_spill] sm:$0xff]  ;;  %v3189_v23 = vld [vmem:[#allocation16_spill] sm:$0xff] }
 0x157   :  { %1677 = vst.msk [vmem:[%s3094_s3 + $0xa0] sm:$0xff] %vm1656_vm3, %v1640_v24  ;;  %v1641_v58 = vmax.f32 %v1605_v3, 0.0  ;;  %v1529_v34 = vmax.f32 %v1064_v53, %v1422_v54  ;;  %v2143_v56 = vpop.f32.mrb[62].mxu0  ;;  %v2183_v57 = vpop.f32.mrb[62].mxu1  ;;  %v3190_v24 = vmax.f32 %v3188_v49, %v3189_v23  ;;  %v3191_v31 = vld [vmem:[#allocation17_spill] sm:$0xff] }
 0x158   :  { %1680 = vst.msk [vmem:[%s3094_s3 + $0xb8] sm:$0xff] %vm1656_vm3, %v1643_v61  ;;  %v1567_v60 = vmax.f32 %v3172_v59, %v1531_v0  ;;  %v1532_v9 = vmax.f32 %v2143_v56, %v2183_v57  ;;  %v1067_v12 = vpop.f32.mrb[63].mxu0  ;;  %v1425_v25 = vpop.f32.mrb[63].mxu1  ;;  %v3192_v61 = vld [vmem:[#allocation18_spill] sm:$0xff] }
 0x159   :  { %1678 = vst.msk [vmem:[%s3094_s3 + $0xa8] sm:$0xff] %vm1656_vm3, %v1641_v58  ;;  %v1565_v43 = vmax.f32 %v3175_v39, %v1529_v34  ;;  %v1530_v46 = vmax.f32 %v1067_v12, %v1425_v25  ;;  %v3193_v0 = vmax.f32 %v3191_v31, %v3192_v61  ;;  %v3194_v39 = vld [vmem:[#allocation19_spill] sm:$0xff] }
 0x15a   :  { %v1610_v14 = vadd.f32 %v2801_v6, %v1567_v60  ;;  %v1568_v62 = vmax.f32 %v3178_v41, %v1532_v9 }
 0x15b   :  { %v1608_v63 = vadd.f32 %v2801_v6, %v1565_v43  ;;  %v1566_v45 = vmax.f32 %v3181_v44, %v1530_v46  ;;  %v3195_v43 = vld [vmem:[#allocation20_spill] sm:$0xff] }
 0x15c   :  { %v1646_v16 = vmax.f32 %v1610_v14, 0.0  ;;  %v1611_v1 = vadd.f32 %v2801_v6, %v1568_v62  ;;  %v3196_v46 = vmax.f32 %v3194_v39, %v3195_v43  ;;  %v3197_v62 = vld [vmem:[#allocation21_spill] sm:$0xff] }
 0x15d   :  { %v1644_v2 = vmax.f32 %v1608_v63, 0.0  ;;  %v1609_v19 = vadd.f32 %v2801_v6, %v1566_v45  ;;  %v2146_v4 = vpop.f32.mrb[64].mxu0  ;;  %v2186_v5 = vpop.f32.mrb[64].mxu1  ;;  %v3198_v63 = vld [vmem:[#allocation22_spill] sm:$0xff] }
 0x15e   :  { %1683 = vst.msk [vmem:[%s3094_s3 + $0xd0] sm:$0xff] %vm1656_vm3, %v1646_v16  ;;  %v1647_v47 = vmax.f32 %v1611_v1, 0.0  ;;  %v1535_v48 = vmax.f32 %v2146_v4, %v2186_v5  ;;  %v1080_v7 = vpop.f32.mrb[65].mxu0  ;;  %v1438_v8 = vpop.f32.mrb[65].mxu1  ;;  %v3199_v42 = vmax.f32 %v3197_v62, %v3198_v63  ;;  %v3200_v16 = vld [vmem:[#allocation23_spill] sm:$0xff]  ;;  %v3201_v1 = vld [vmem:[#allocation24_spill] sm:$0xff] }
 0x15f   :  { %1681 = vst.msk [vmem:[%s3094_s3 + $0xc0] sm:$0xff] %vm1656_vm3, %v1644_v2  ;;  %v1645_v40 = vmax.f32 %v1609_v19, 0.0  ;;  %v1533_v17 = vmax.f32 %v1080_v7, %v1438_v8  ;;  %v2147_v18 = vpop.f32.mrb[66].mxu0  ;;  %v2187_v29 = vpop.f32.mrb[66].mxu1  ;;  %v3202_v2 = vmax.f32 %v3200_v16, %v3201_v1  ;;  %v3203_v5 = vld [vmem:[#allocation25_spill] sm:$0xff] }
 0x160   :  { %1684 = vst.msk [vmem:[%s3094_s3 + $0xd8] sm:$0xff] %vm1656_vm3, %v1647_v47  ;;  %v1571_v33 = vmax.f32 %v3184_v32, %v1535_v48  ;;  %v1536_v20 = vmax.f32 %v2147_v18, %v2187_v29  ;;  %v1083_v21 = vpop.f32.mrb[67].mxu0  ;;  %v1441_v35 = vpop.f32.mrb[67].mxu1  ;;  %v3204_v47 = vld [vmem:[#allocation26_spill] sm:$0xff] }
 0x161   :  { %1682 = vst.msk [vmem:[%s3094_s3 + $0xc8] sm:$0xff] %vm1656_vm3, %v1645_v40  ;;  %v1569_v50 = vmax.f32 %v3187_v11, %v1533_v17  ;;  %v1534_v51 = vmax.f32 %v1083_v21, %v1441_v35  ;;  %v3205_v48 = vmax.f32 %v3203_v5, %v3204_v47 }
 0x162   :  { %v1614_v37 = vadd.f32 %v2801_v6, %v1571_v33  ;;  %v1572_v3 = vmax.f32 %v3190_v24, %v1536_v20 }
 0x163   :  { %v1612_v13 = vadd.f32 %v2801_v6, %v1569_v50  ;;  %v1570_v53 = vmax.f32 %v3193_v0, %v1534_v51 }
 0x164   :  { %v1650_v54 = vmax.f32 %v1614_v37, 0.0  ;;  %v1615_v58 = vadd.f32 %v2801_v6, %v1572_v3 }
 0x165   :  { %v1648_v34 = vmax.f32 %v1612_v13, 0.0  ;;  %v1613_v56 = vadd.f32 %v2801_v6, %v1570_v53  ;;  %v2150_v57 = vpop.f32.mrb[68].mxu0  ;;  %v2190_v52 = vpop.f32.mrb[68].mxu1 }
 0x166   :  { %1687 = vst.msk [vmem:[%s3094_s3 + $0xf0] sm:$0xff] %vm1656_vm3, %v1650_v54  ;;  %v1651_v55 = vmax.f32 %v1615_v58, 0.0  ;;  %v1539_v59 = vmax.f32 %v2150_v57, %v2190_v52  ;;  %v1096_v60 = vpop.f32.mrb[69].mxu0  ;;  %v1454_v9 = vpop.f32.mrb[69].mxu1 }
 0x167   :  { %1685 = vst.msk [vmem:[%s3094_s3 + $0xe0] sm:$0xff] %vm1656_vm3, %v1648_v34  ;;  %v1649_v12 = vmax.f32 %v1613_v56, 0.0  ;;  %v1537_v25 = vmax.f32 %v1096_v60, %v1454_v9  ;;  %v2151_v28 = vpop.f32.mrb[70].mxu0  ;;  %v2191_v38 = vpop.f32.mrb[70].mxu1 }
 0x168   :  { %1688 = vst.msk [vmem:[%s3094_s3 + $0xf8] sm:$0xff] %vm1656_vm3, %v1651_v55  ;;  %v1575_v14 = vmax.f32 %v3196_v46, %v1539_v59  ;;  %v1540_v15 = vmax.f32 %v2151_v28, %v2191_v38  ;;  %v1099_v26 = vpop.f32.mrb[71].mxu0  ;;  %v1457_v41 = vpop.f32.mrb[71].mxu1 }
 0x169   :  { %1686 = vst.msk [vmem:[%s3094_s3 + $0xe8] sm:$0xff] %vm1656_vm3, %v1649_v12  ;;  %v1573_v27 = vmax.f32 %v3199_v42, %v1537_v25  ;;  %v1538_v44 = vmax.f32 %v1099_v26, %v1457_v41 }
 0x16a   :  { %v1618_v45 = vadd.f32 %v2801_v6, %v1575_v14  ;;  %v1576_v19 = vmax.f32 %v3202_v2, %v1540_v15 }
 0x16b   :  { %v1616_v4 = vadd.f32 %v2801_v6, %v1573_v27  ;;  %v1574_v7 = vmax.f32 %v3205_v48, %v1538_v44 }
 0x16c   :  { %v1654_v8 = vmax.f32 %v1618_v45, 0.0  ;;  %v1619_v40 = vadd.f32 %v2801_v6, %v1576_v19 }
 0x16d   :  { %v1652_v17 = vmax.f32 %v1616_v4, 0.0  ;;  %v1617_v18 = vadd.f32 %v2801_v6, %v1574_v7 }
 0x16e   :  { %1691 = vst.msk [vmem:[%s3094_s3 + $0x110] sm:$0xff] %vm1656_vm3, %v1654_v8  ;;  %v1655_v29 = vmax.f32 %v1619_v40, 0.0 }
 0x16f   :  { %1689 = vst.msk [vmem:[%s3094_s3 + $0x100] sm:$0xff] %vm1656_vm3, %v1652_v17  ;;  %v1653_v30 = vmax.f32 %v1617_v18, 0.0 }
 0x170   :  { %1692 = vst.msk [vmem:[%s3094_s3 + $0x118] sm:$0xff] %vm1656_vm3, %v1655_v29 }
 0x171   :  { %1690 = vst.msk [vmem:[%s3094_s3 + $0x108] sm:$0xff] %vm1656_vm3, %v1653_v30 }

// kernel: conv_and_fc_quan_forward.4
= control target key start
LH: loop header
LB: loop body
LE: loop exit
PB: predicated region body
PF: predicated region fallthrough
CT: control target
= control target key end

     0   :  { %vm320_vm0 = vcmask 1041408   ;;  %vm313_vm1 = vcmask 949248   ;;  %vm902_vm2 = vcmask 408576   ;;  %s1787_s1 = inlined_call_operand.vmem [shape: bf16[500,50], index: 1, kind: input, shape index: {}]   ;;  %s1788_s0 = inlined_call_operand.vmem [shape: bf16[4,32,500], index: 0, kind: input, shape index: {}]   ;;  %s1789_s2 = inlined_call_operand.vmem [shape: f32[1,50], index: 2, kind: input, shape index: {}]   ;;  %s1790_s3 = inlined_call_operand.vmem [shape: f32[32,50], index: 3, kind: output, shape index: {}]  }
   0x1   :  { %v1339_v0 = vld [vmem:[%s1787_s1 + $0x40] sm:$0xff]   ;;  %v1362_v4 = vld [vmem:[%s1787_s1 + $0x48] sm:$0xff]   ;;  %v1386_v8 = vld [vmem:[%s1787_s1 + $0x50] sm:$0xff]  }
   0x2   :  { %v1344_v1 = vld [vmem:[%s1787_s1 + $0xc0] sm:$0xff]   ;;  %1008 = vmatprep.subr.bf16.mxu0 %v1339_v0  ;;  %v1368_v5 = vld [vmem:[%s1787_s1 + $0xc8] sm:$0xff]   ;;  %v1392_v9 = vld [vmem:[%s1787_s1 + $0xd0] sm:$0xff]  }
   0x3   :  { %v1350_v2 = vld [vmem:[%s1787_s1] sm:$0xff]   ;;  %1036 = vmatprep.subr.bf16.mxu1 %v1344_v1  ;;  %v1374_v6 = vld [vmem:[%s1787_s1 + $0x8] sm:$0xff]   ;;  %v1398_v10 = vld [vmem:[%s1787_s1 + $0x10] sm:$0xff]  }
   0x4   :  { %v1356_v3 = vld [vmem:[%s1787_s1 + $0x80] sm:$0xff]   ;;  %1009 = vmatpush3.bf16.msra.mxu0 %v1350_v2  ;;  %v1380_v7 = vld [vmem:[%s1787_s1 + $0x88] sm:$0xff]   ;;  %v1404_v11 = vld [vmem:[%s1787_s1 + $0x90] sm:$0xff]  }
   0x5   :  { %1037 = vmatpush3.bf16.msra.mxu1 %v1356_v3  ;;  %1010 = vmatprep.subr.bf16.mxu0 %v1362_v4  ;;  %v1410_v12 = vld [vmem:[%s1787_s1 + $0x58] sm:$0xff]   ;;  %v1434_v16 = vld [vmem:[%s1787_s1 + $0x60] sm:$0xff]   ;;  %v1458_v20 = vld [vmem:[%s1787_s1 + $0x68] sm:$0xff]  }
   0x6   :  { %1038 = vmatprep.subr.bf16.mxu1 %v1368_v5  ;;  %v1416_v13 = vld [vmem:[%s1787_s1 + $0xd8] sm:$0xff]   ;;  %v1440_v17 = vld [vmem:[%s1787_s1 + $0xe0] sm:$0xff]   ;;  %v1464_v21 = vld [vmem:[%s1787_s1 + $0xe8] sm:$0xff]  }
   0x7   :  { %v1422_v14 = vld [vmem:[%s1787_s1 + $0x18] sm:$0xff]   ;;  %v1446_v18 = vld [vmem:[%s1787_s1 + $0x20] sm:$0xff]   ;;  %v1470_v22 = vld [vmem:[%s1787_s1 + $0x28] sm:$0xff]  }
   0x8   :  { %1011 = vmatpush3.bf16.msra.mxu0 %v1374_v6  ;;  %v1428_v15 = vld [vmem:[%s1787_s1 + $0x98] sm:$0xff]   ;;  %v1452_v19 = vld [vmem:[%s1787_s1 + $0xa0] sm:$0xff]   ;;  %v1476_v23 = vld [vmem:[%s1787_s1 + $0xa8] sm:$0xff]  }
   0x9   :  { %1039 = vmatpush3.bf16.msra.mxu1 %v1380_v7  ;;  %1012 = vmatprep.subr.bf16.mxu0 %v1386_v8  ;;  %v1482_v24 = vld [vmem:[%s1787_s1 + $0x70] sm:$0xff]   ;;  %v1506_v28 = vld [vmem:[%s1787_s1 + $0x78] sm:$0xff]  }
   0xa   :  { %1040 = vmatprep.subr.bf16.mxu1 %v1392_v9  ;;  %v1488_v25 = vld [vmem:[%s1787_s1 + $0xf0] sm:$0xff]   ;;  %v1512_v29 = vld [vmem:[%s1787_s1 + $0xf8] ss:$0 sps:$4 sm:$0x33]   ;;  %v1273_v35 = vld [vmem:[%s1788_s0 + $0xc] ss:$16 sps:$4 sm:$0xff]  }
   0xb   :  { %v1494_v26 = vld [vmem:[%s1787_s1 + $0x30] sm:$0xff]   ;;  %v1517_v30 = vld [vmem:[%s1787_s1 + $0x38] sm:$0xff]   ;;  %951 = vmatprep.mubr.msk.bf16.mxu1 %vm313_vm1, %v1273_v35 }
   0xc   :  { %1013 = vmatpush3.bf16.msra.mxu0 %v1398_v10  ;;  %v1500_v27 = vld [vmem:[%s1787_s1 + $0xb0] sm:$0xff]   ;;  %v1525_v31 = vld [vmem:[%s1787_s1 + $0xb8] sm:$0xff]  }
   0xd   :  { %1041 = vmatpush3.bf16.msra.mxu1 %v1404_v11  ;;  %1014 = vmatprep.subr.bf16.mxu0 %v1410_v12  ;;  %v1268_v32 = vld [vmem:[%s1788_s0] ss:$16 sps:$4 sm:$0xff]   ;;  %v1270_v33 = vld [vmem:[%s1788_s0 + $0x4] ss:$16 sps:$4 sm:$0xff]   ;;  %v1271_v34 = vld [vmem:[%s1788_s0 + $0x8] ss:$16 sps:$4 sm:$0xff]  }
   0xe   :  { %1042 = vmatprep.subr.bf16.mxu1 %v1416_v13  ;;  %356 = vmatprep.mubr.bf16.mxu0 %v1270_v33  ;;  %v1274_v36 = vld [vmem:[%s1788_s0 + $0x24] ss:$16 sps:$4 sm:$0xff]   ;;  %v1276_v37 = vld [vmem:[%s1788_s0 + $0x2c] ss:$16 sps:$4 sm:$0xff]   ;;  %v1278_v38 = vld [vmem:[%s1788_s0 + $0x20] ss:$16 sps:$4 sm:$0xff]  }
   0xf   :  { %v1282_v39 = vld [vmem:[%s1788_s0 + $0x44] ss:$16 sps:$4 sm:$0xff]   ;;  %v1279_v40 = vld [vmem:[%s1788_s0 + $0x28] ss:$16 sps:$4 sm:$0xff]   ;;  %v1285_v41 = vld [vmem:[%s1788_s0 + $0x4c] ss:$16 sps:$4 sm:$0xff]  }
  0x10   :  { %1015 = vmatpush3.bf16.msra.mxu0 %v1422_v14  ;;  %v1280_v42 = vld [vmem:[%s1788_s0 + $0x40] ss:$16 sps:$4 sm:$0xff]   ;;  %v1286_v43 = vld [vmem:[%s1788_s0 + $0x64] ss:$16 sps:$4 sm:$0xff]   ;;  %v1283_v44 = vld [vmem:[%s1788_s0 + $0x48] ss:$16 sps:$4 sm:$0xff]  }
  0x11   :  { %1043 = vmatpush3.bf16.msra.mxu1 %v1428_v15  ;;  %1016 = vmatprep.subr.bf16.mxu0 %v1434_v16  ;;  %v1288_v45 = vld [vmem:[%s1788_s0 + $0x6c] ss:$16 sps:$4 sm:$0xff]   ;;  %v1290_v46 = vld [vmem:[%s1788_s0 + $0x60] ss:$16 sps:$4 sm:$0xff]   ;;  %v1294_v47 = vld [vmem:[%s1788_s0 + $0x84] ss:$16 sps:$4 sm:$0xff]  }
  0x12   :  { %1044 = vmatprep.subr.bf16.mxu1 %v1440_v17  ;;  %v1291_v48 = vld [vmem:[%s1788_s0 + $0x68] ss:$16 sps:$4 sm:$0xff]   ;;  %v1297_v49 = vld [vmem:[%s1788_s0 + $0x8c] ss:$16 sps:$4 sm:$0xff]   ;;  %v1292_v50 = vld [vmem:[%s1788_s0 + $0x80] ss:$16 sps:$4 sm:$0xff]  }
  0x13   :  { %v1298_v51 = vld [vmem:[%s1788_s0 + $0xa4] ss:$16 sps:$4 sm:$0xff]   ;;  %v1295_v52 = vld [vmem:[%s1788_s0 + $0x88] ss:$16 sps:$4 sm:$0xff]   ;;  %v1300_v53 = vld [vmem:[%s1788_s0 + $0xac] ss:$16 sps:$4 sm:$0xff]  }
  0x14   :  { %1017 = vmatpush3.bf16.msra.mxu0 %v1446_v18  ;;  %v1302_v54 = vld [vmem:[%s1788_s0 + $0xa0] ss:$16 sps:$4 sm:$0xff]   ;;  %v1306_v55 = vld [vmem:[%s1788_s0 + $0xc4] ss:$16 sps:$4 sm:$0xff]   ;;  %v1303_v56 = vld [vmem:[%s1788_s0 + $0xa8] ss:$16 sps:$4 sm:$0xff]  }
  0x15   :  { %1045 = vmatpush3.bf16.msra.mxu1 %v1452_v19  ;;  %1018 = vmatprep.subr.bf16.mxu0 %v1458_v20  ;;  %v1309_v57 = vld [vmem:[%s1788_s0 + $0xcc] ss:$16 sps:$4 sm:$0xff]   ;;  %v1304_v58 = vld [vmem:[%s1788_s0 + $0xc0] ss:$16 sps:$4 sm:$0xff]   ;;  %v1310_v59 = vld [vmem:[%s1788_s0 + $0xe4] ss:$16 sps:$4 sm:$0xff]  }
  0x16   :  { %1046 = vmatprep.subr.bf16.mxu1 %v1464_v21  ;;  %v1307_v60 = vld [vmem:[%s1788_s0 + $0xc8] ss:$16 sps:$4 sm:$0xff]   ;;  %v1312_v61 = vld [vmem:[%s1788_s0 + $0xec] ss:$16 sps:$4 sm:$0xff]   ;;  %v1314_v62 = vld [vmem:[%s1788_s0 + $0xe0] ss:$16 sps:$4 sm:$0xff]  }
  0x17   :  { %v1315_v63 = vld [vmem:[%s1788_s0 + $0xe8] ss:$16 sps:$4 sm:$0xff]  }
  0x18   :  { %1019 = vmatpush3.bf16.msra.mxu0 %v1470_v22 }
  0x19   :  { %1047 = vmatpush3.bf16.msra.mxu1 %v1476_v23  ;;  %1020 = vmatprep.subr.bf16.mxu0 %v1482_v24 }
  0x1a   :  { %1048 = vmatprep.subr.bf16.mxu1 %v1488_v25 }
  0x1c   :  { %1021 = vmatpush3.bf16.msra.mxu0 %v1494_v26 }
  0x1d   :  { %1049 = vmatpush3.bf16.msra.mxu1 %v1500_v27  ;;  %1022 = vmatprep.subr.bf16.mxu0 %v1506_v28 }
  0x1e   :  { %1232 = vmatprep.subr.msk.bf16.mxu1 %vm320_vm0, %v1512_v29 }
  0x20   :  { %1023 = vmatpush3.bf16.msra.mxu0 %v1517_v30 }
  0x21   :  { %1051 = vmatpush3.bf16.msra.mxu1 %v1525_v31  ;;  %1064 = vmatprep.subr.bf16.mxu0 %v1339_v0 }
  0x22   :  { %1092 = vmatprep.subr.bf16.mxu1 %v1344_v1 }
  0x23   :  { %357 = vmatmul.mubr.bf16.vlgmr.msra.gmra.mrb[0].mxu0 %v1268_v32 }
  0x24   :  { %1065 = vmatpush3.bf16.msra.mxu0 %v1350_v2  ;;  %406 = vmatmul.mubr.bf16.vlgmr.msra.gmra.mrb[0].mxu1 %v1271_v34 }
  0x25   :  { %1066 = vmatprep.subr.bf16.mxu0 %v1362_v4  ;;  %1093 = vmatpush3.bf16.msra.mxu1 %v1356_v3 }
  0x26   :  { %364 = vmatprep.mubr.bf16.mxu0 %v1274_v36  ;;  %1094 = vmatprep.subr.bf16.mxu1 %v1368_v5 }
  0x27   :  { %952 = vmatprep.mubr.msk.bf16.mxu1 %vm313_vm1, %v1276_v37 }
  0x28   :  { %1067 = vmatpush3.bf16.msra.mxu0 %v1374_v6 }
  0x29   :  { %1068 = vmatprep.subr.bf16.mxu0 %v1386_v8  ;;  %1095 = vmatpush3.bf16.msra.mxu1 %v1380_v7 }
  0x2a   :  { %1096 = vmatprep.subr.bf16.mxu1 %v1392_v9 }
  0x2b   :  { %365 = vmatmul.mubr.bf16.gmra.mrb[4].mxu0 %v1278_v38 }
  0x2c   :  { %1069 = vmatpush3.bf16.msra.mxu0 %v1398_v10  ;;  %507 = vmatprep.mubr.bf16.mxu0 %v1282_v39 }
  0x2d   :  { %1070 = vmatprep.subr.bf16.mxu0 %v1410_v12  ;;  %414 = vmatmul.mubr.bf16.gmra.mrb[4].mxu1 %v1279_v40 }
  0x2e   :  { %1097 = vmatpush3.bf16.msra.mxu1 %v1404_v11  ;;  %969 = vmatprep.mubr.msk.bf16.mxu1 %vm313_vm1, %v1285_v41 }
  0x2f   :  { %1098 = vmatprep.subr.bf16.mxu1 %v1416_v13 }
  0x30   :  { %1071 = vmatpush3.bf16.msra.mxu0 %v1422_v14 }
  0x31   :  { %1072 = vmatprep.subr.bf16.mxu0 %v1434_v16 }
  0x32   :  { %1099 = vmatpush3.bf16.msra.mxu1 %v1428_v15 }
  0x33   :  { %1100 = vmatprep.subr.bf16.mxu1 %v1440_v17 }
  0x34   :  { %1073 = vmatpush3.bf16.msra.mxu0 %v1446_v18 }
  0x35   :  { %1074 = vmatprep.subr.bf16.mxu0 %v1458_v20 }
  0x36   :  { %1101 = vmatpush3.bf16.msra.mxu1 %v1452_v19 }
  0x37   :  { %1102 = vmatprep.subr.bf16.mxu1 %v1464_v21 }
  0x38   :  { %1075 = vmatpush3.bf16.msra.mxu0 %v1470_v22 }
  0x39   :  { %1076 = vmatprep.subr.bf16.mxu0 %v1482_v24 }
  0x3a   :  { %1103 = vmatpush3.bf16.msra.mxu1 %v1476_v23 }
  0x3b   :  { %1104 = vmatprep.subr.bf16.mxu1 %v1488_v25 }
  0x3c   :  { %1077 = vmatpush3.bf16.msra.mxu0 %v1494_v26 }
  0x3d   :  { %1078 = vmatprep.subr.bf16.mxu0 %v1506_v28 }
  0x3e   :  { %1105 = vmatpush3.bf16.msra.mxu1 %v1500_v27 }
  0x3f   :  { %1233 = vmatprep.subr.msk.bf16.mxu1 %vm320_vm0, %v1512_v29 }
  0x40   :  { %1079 = vmatpush3.bf16.msra.mxu0 %v1517_v30 }
  0x41   :  { %1120 = vmatprep.subr.bf16.mxu0 %v1339_v0 }
  0x42   :  { %1107 = vmatpush3.bf16.msra.mxu1 %v1525_v31 }
  0x43   :  { %508 = vmatmul.mubr.bf16.vlgmr.msra.gmra.mrb[8].mxu0 %v1280_v42  ;;  %1148 = vmatprep.subr.bf16.mxu1 %v1344_v1 }
  0x44   :  { %1121 = vmatpush3.bf16.msra.mxu0 %v1350_v2  ;;  %515 = vmatprep.mubr.bf16.mxu0 %v1286_v43 }
  0x45   :  { %557 = vmatmul.mubr.bf16.vlgmr.msra.gmra.mrb[8].mxu1 %v1283_v44  ;;  %1122 = vmatprep.subr.bf16.mxu0 %v1362_v4 }
  0x46   :  { %1149 = vmatpush3.bf16.msra.mxu1 %v1356_v3  ;;  %970 = vmatprep.mubr.msk.bf16.mxu1 %vm313_vm1, %v1288_v45 }
  0x47   :  { %1150 = vmatprep.subr.bf16.mxu1 %v1368_v5 }
  0x48   :  { %1123 = vmatpush3.bf16.msra.mxu0 %v1374_v6 }
  0x49   :  { %1124 = vmatprep.subr.bf16.mxu0 %v1386_v8 }
  0x4a   :  { %1151 = vmatpush3.bf16.msra.mxu1 %v1380_v7 }
  0x4b   :  { %516 = vmatmul.mubr.bf16.gmra.mrb[12].mxu0 %v1290_v46  ;;  %1152 = vmatprep.subr.bf16.mxu1 %v1392_v9 }
  0x4c   :  { %1125 = vmatpush3.bf16.msra.mxu0 %v1398_v10  ;;  %658 = vmatprep.mubr.bf16.mxu0 %v1294_v47 }
  0x4d   :  { %565 = vmatmul.mubr.bf16.gmra.mrb[12].mxu1 %v1291_v48  ;;  %1126 = vmatprep.subr.bf16.mxu0 %v1410_v12 }
  0x4e   :  { %1153 = vmatpush3.bf16.msra.mxu1 %v1404_v11  ;;  %987 = vmatprep.mubr.msk.bf16.mxu1 %vm313_vm1, %v1297_v49 }
  0x4f   :  { %1154 = vmatprep.subr.bf16.mxu1 %v1416_v13 }
  0x50   :  { %1127 = vmatpush3.bf16.msra.mxu0 %v1422_v14 }
  0x51   :  { %1128 = vmatprep.subr.bf16.mxu0 %v1434_v16 }
  0x52   :  { %1155 = vmatpush3.bf16.msra.mxu1 %v1428_v15 }
  0x53   :  { %1156 = vmatprep.subr.bf16.mxu1 %v1440_v17 }
  0x54   :  { %1129 = vmatpush3.bf16.msra.mxu0 %v1446_v18 }
  0x55   :  { %1130 = vmatprep.subr.bf16.mxu0 %v1458_v20 }
  0x56   :  { %1157 = vmatpush3.bf16.msra.mxu1 %v1452_v19 }
  0x57   :  { %1158 = vmatprep.subr.bf16.mxu1 %v1464_v21 }
  0x58   :  { %1131 = vmatpush3.bf16.msra.mxu0 %v1470_v22 }
  0x59   :  { %1132 = vmatprep.subr.bf16.mxu0 %v1482_v24 }
  0x5a   :  { %1159 = vmatpush3.bf16.msra.mxu1 %v1476_v23 }
  0x5b   :  { %1160 = vmatprep.subr.bf16.mxu1 %v1488_v25 }
  0x5c   :  { %1133 = vmatpush3.bf16.msra.mxu0 %v1494_v26 }
  0x5d   :  { %1134 = vmatprep.subr.bf16.mxu0 %v1506_v28 }
  0x5e   :  { %1161 = vmatpush3.bf16.msra.mxu1 %v1500_v27 }
  0x5f   :  { %1234 = vmatprep.subr.msk.bf16.mxu1 %vm320_vm0, %v1512_v29 }
  0x60   :  { %1135 = vmatpush3.bf16.msra.mxu0 %v1517_v30 }
  0x61   :  { %1176 = vmatprep.subr.bf16.mxu0 %v1339_v0 }
  0x62   :  { %1163 = vmatpush3.bf16.msra.mxu1 %v1525_v31 }
  0x63   :  { %659 = vmatmul.mubr.bf16.vlgmr.msra.gmra.mrb[16].mxu0 %v1292_v50  ;;  %1204 = vmatprep.subr.bf16.mxu1 %v1344_v1 }
  0x64   :  { %1177 = vmatpush3.bf16.msra.mxu0 %v1350_v2  ;;  %666 = vmatprep.mubr.bf16.mxu0 %v1298_v51 }
  0x65   :  { %708 = vmatmul.mubr.bf16.vlgmr.msra.gmra.mrb[16].mxu1 %v1295_v52  ;;  %1178 = vmatprep.subr.bf16.mxu0 %v1362_v4 }
  0x66   :  { %1205 = vmatpush3.bf16.msra.mxu1 %v1356_v3  ;;  %988 = vmatprep.mubr.msk.bf16.mxu1 %vm313_vm1, %v1300_v53 }
  0x67   :  { %1206 = vmatprep.subr.bf16.mxu1 %v1368_v5 }
  0x68   :  { %1179 = vmatpush3.bf16.msra.mxu0 %v1374_v6 }
  0x69   :  { %1180 = vmatprep.subr.bf16.mxu0 %v1386_v8 }
  0x6a   :  { %1207 = vmatpush3.bf16.msra.mxu1 %v1380_v7 }
  0x6b   :  { %1208 = vmatprep.subr.bf16.mxu1 %v1392_v9  ;;  %667 = vmatmul.mubr.bf16.gmra.mrb[20].mxu0 %v1302_v54 }
  0x6c   :  { %1181 = vmatpush3.bf16.msra.mxu0 %v1398_v10  ;;  %809 = vmatprep.mubr.bf16.mxu0 %v1306_v55 }
  0x6d   :  { %1182 = vmatprep.subr.bf16.mxu0 %v1410_v12  ;;  %716 = vmatmul.mubr.bf16.gmra.mrb[20].mxu1 %v1303_v56 }
  0x6e   :  { %1209 = vmatpush3.bf16.msra.mxu1 %v1404_v11  ;;  %1005 = vmatprep.mubr.msk.bf16.mxu1 %vm313_vm1, %v1309_v57 }
  0x6f   :  { %1210 = vmatprep.subr.bf16.mxu1 %v1416_v13 }
  0x70   :  { %1183 = vmatpush3.bf16.msra.mxu0 %v1422_v14 }
  0x71   :  { %1184 = vmatprep.subr.bf16.mxu0 %v1434_v16 }
  0x72   :  { %1211 = vmatpush3.bf16.msra.mxu1 %v1428_v15 }
  0x73   :  { %1212 = vmatprep.subr.bf16.mxu1 %v1440_v17 }
  0x74   :  { %1185 = vmatpush3.bf16.msra.mxu0 %v1446_v18 }
  0x75   :  { %1186 = vmatprep.subr.bf16.mxu0 %v1458_v20 }
  0x76   :  { %1213 = vmatpush3.bf16.msra.mxu1 %v1452_v19 }
  0x77   :  { %1214 = vmatprep.subr.bf16.mxu1 %v1464_v21 }
  0x78   :  { %1187 = vmatpush3.bf16.msra.mxu0 %v1470_v22 }
  0x79   :  { %1188 = vmatprep.subr.bf16.mxu0 %v1482_v24 }
  0x7a   :  { %1215 = vmatpush3.bf16.msra.mxu1 %v1476_v23 }
  0x7b   :  { %1216 = vmatprep.subr.bf16.mxu1 %v1488_v25 }
  0x7c   :  { %1189 = vmatpush3.bf16.msra.mxu0 %v1494_v26 }
  0x7d   :  { %1190 = vmatprep.subr.bf16.mxu0 %v1506_v28 }
  0x7e   :  { %1217 = vmatpush3.bf16.msra.mxu1 %v1500_v27 }
  0x7f   :  { %1235 = vmatprep.subr.msk.bf16.mxu1 %vm320_vm0, %v1512_v29 }
  0x80   :  { %1191 = vmatpush3.bf16.msra.mxu0 %v1517_v30 }
  0x82   :  { %1219 = vmatpush3.bf16.msra.mxu1 %v1525_v31 }
  0x83   :  { %810 = vmatmul.mubr.bf16.vlgmr.msra.gmra.mrb[24].mxu0 %v1304_v58 }
  0x84   :  { %817 = vmatprep.mubr.bf16.mxu0 %v1310_v59 }
  0x85   :  { %859 = vmatmul.mubr.bf16.vlgmr.msra.gmra.mrb[24].mxu1 %v1307_v60 }
  0x86   :  { %1006 = vmatprep.mubr.msk.bf16.mxu1 %vm313_vm1, %v1312_v61 }
  0x8b   :  { %818 = vmatmul.mubr.bf16.gmra.mrb[28].mxu0 %v1314_v62 }
  0x8d   :  { %867 = vmatmul.mubr.bf16.gmra.mrb[28].mxu1 %v1315_v63 }
  0xf6   :  { %v1024_v0 = vpop.f32.mrb[0].mxu0 }
  0xf7   :  { %v1025_v1 = vpop.f32.mrb[1].mxu0  ;;  %v1052_v2 = vpop.f32.mrb[0].mxu1 }
  0xf8   :  { %v1026_v3 = vadd.f32 %v1025_v1, %v1024_v0  ;;  %v1027_v4 = vpop.f32.mrb[2].mxu0  ;;  %v1053_v5 = vpop.f32.mrb[1].mxu1 }
  0xf9   :  { %v1028_v6 = vpop.f32.mrb[3].mxu0  ;;  %v1054_v7 = vadd.f32 %v1053_v5, %v1052_v2  ;;  %v1055_v8 = vpop.f32.mrb[2].mxu1 }
  0xfa   :  { %v1029_v9 = vadd.f32 %v1028_v6, %v1027_v4  ;;  %v1056_v10 = vpop.f32.mrb[3].mxu1 }
  0xfb   :  { %v1732_v11 = vadd.f32 %v1054_v7, %v1026_v3  ;;  %v1057_v12 = vadd.f32 %v1056_v10, %v1055_v8 }
  0xfd   :  { %v1734_v13 = vadd.f32 %v1057_v12, %v1029_v9 }
  0xfe   :  { %v1030_v14 = vpop.f32.mrb[4].mxu0 }
  0xff   :  { %v1031_v15 = vpop.f32.mrb[5].mxu0 }
 0x100   :  { %v1058_v16 = vpop.f32.mrb[4].mxu1  ;;  %v1032_v17 = vadd.f32 %v1031_v15, %v1030_v14  ;;  %v1033_v18 = vpop.f32.mrb[6].mxu0 }
 0x101   :  { %v1059_v19 = vpop.f32.mrb[5].mxu1  ;;  %v1034_v20 = vpop.f32.mrb[7].mxu0 }
 0x102   :  { %v1060_v21 = vadd.f32 %v1059_v19, %v1058_v16  ;;  %v1061_v22 = vpop.f32.mrb[6].mxu1  ;;  %v1035_v23 = vadd.f32 %v1034_v20, %v1033_v18 }
 0x103   :  { %v1062_v24 = vpop.f32.mrb[7].mxu1 }
 0x104   :  { %v1736_v25 = vadd.f32 %v1060_v21, %v1032_v17  ;;  %v1063_v26 = vadd.f32 %v1062_v24, %v1061_v22 }
 0x106   :  { %v1738_v27 = vadd.f32 %v1063_v26, %v1035_v23 }
 0x116   :  { %v1080_v28 = vpop.f32.mrb[8].mxu0 }
 0x117   :  { %v1081_v29 = vpop.f32.mrb[9].mxu0 }
 0x118   :  { %v1108_v30 = vpop.f32.mrb[8].mxu1  ;;  %v1082_v31 = vadd.f32 %v1081_v29, %v1080_v28  ;;  %v1083_v32 = vpop.f32.mrb[10].mxu0 }
 0x119   :  { %v1109_v33 = vpop.f32.mrb[9].mxu1  ;;  %v1084_v34 = vpop.f32.mrb[11].mxu0 }
 0x11a   :  { %v1110_v35 = vadd.f32 %v1109_v33, %v1108_v30  ;;  %v1111_v36 = vpop.f32.mrb[10].mxu1  ;;  %v1085_v37 = vadd.f32 %v1084_v34, %v1083_v32 }
 0x11b   :  { %v1112_v38 = vpop.f32.mrb[11].mxu1 }
 0x11c   :  { %v1740_v39 = vadd.f32 %v1110_v35, %v1082_v31  ;;  %v1113_v40 = vadd.f32 %v1112_v38, %v1111_v36 }
 0x11e   :  { %v875_v41 = vmax.f32 %v1732_v11, %v1740_v39  ;;  %v1744_v42 = vadd.f32 %v1113_v40, %v1085_v37  ;;  %v1086_v43 = vpop.f32.mrb[12].mxu0 }
 0x11f   :  { %v1087_v44 = vpop.f32.mrb[13].mxu0 }
 0x120   :  { %v876_v45 = vmax.f32 %v1734_v13, %v1744_v42  ;;  %v1114_v46 = vpop.f32.mrb[12].mxu1  ;;  %v1088_v47 = vadd.f32 %v1087_v44, %v1086_v43  ;;  %v1089_v48 = vpop.f32.mrb[14].mxu0 }
 0x121   :  { %v1115_v49 = vpop.f32.mrb[13].mxu1  ;;  %v1090_v50 = vpop.f32.mrb[15].mxu0 }
 0x122   :  { %v1116_v51 = vadd.f32 %v1115_v49, %v1114_v46  ;;  %v1117_v52 = vpop.f32.mrb[14].mxu1  ;;  %v1091_v53 = vadd.f32 %v1090_v50, %v1089_v48  ;;  %v1007_v48 = vld [vmem:[%s1789_s2] ss:$0 sm:$0xff] }
 0x123   :  { %v1118_v54 = vpop.f32.mrb[15].mxu1 }
 0x124   :  { %v1748_v55 = vadd.f32 %v1116_v51, %v1088_v47  ;;  %v1119_v56 = vadd.f32 %v1118_v54, %v1117_v52 }
 0x126   :  { %v877_v57 = vmax.f32 %v1736_v25, %v1748_v55  ;;  %v1752_v58 = vadd.f32 %v1119_v56, %v1091_v53 }
 0x128   :  { %v878_v59 = vmax.f32 %v1738_v27, %v1752_v58 }
 0x136   :  { %v1136_v60 = vpop.f32.mrb[16].mxu0 }
 0x137   :  { %v1137_v61 = vpop.f32.mrb[17].mxu0 }
 0x138   :  { %v1164_v62 = vpop.f32.mrb[16].mxu1  ;;  %v1138_v63 = vadd.f32 %v1137_v61, %v1136_v60  ;;  %v1139_v0 = vpop.f32.mrb[18].mxu0 }
 0x139   :  { %v1165_v1 = vpop.f32.mrb[17].mxu1  ;;  %v1140_v2 = vpop.f32.mrb[19].mxu0 }
 0x13a   :  { %v1166_v3 = vadd.f32 %v1165_v1, %v1164_v62  ;;  %v1167_v4 = vpop.f32.mrb[18].mxu1  ;;  %v1141_v5 = vadd.f32 %v1140_v2, %v1139_v0 }
 0x13b   :  { %v1168_v6 = vpop.f32.mrb[19].mxu1 }
 0x13c   :  { %v710_v7 = vadd.f32 %v1166_v3, %v1138_v63  ;;  %v1169_v8 = vadd.f32 %v1168_v6, %v1167_v4 }
 0x13e   :  { %v713_v9 = vadd.f32 %v1169_v8, %v1141_v5  ;;  %v1142_v10 = vpop.f32.mrb[20].mxu0 }
 0x13f   :  { %v1143_v12 = vpop.f32.mrb[21].mxu0 }
 0x140   :  { %v1170_v14 = vpop.f32.mrb[20].mxu1  ;;  %v1144_v15 = vadd.f32 %v1143_v12, %v1142_v10  ;;  %v1145_v16 = vpop.f32.mrb[22].mxu0 }
 0x141   :  { %v1171_v17 = vpop.f32.mrb[21].mxu1  ;;  %v1146_v18 = vpop.f32.mrb[23].mxu0 }
 0x142   :  { %v1172_v19 = vadd.f32 %v1171_v17, %v1170_v14  ;;  %v1173_v20 = vpop.f32.mrb[22].mxu1  ;;  %v1147_v21 = vadd.f32 %v1146_v18, %v1145_v16 }
 0x143   :  { %v1174_v22 = vpop.f32.mrb[23].mxu1 }
 0x144   :  { %v718_v23 = vadd.f32 %v1172_v19, %v1144_v15  ;;  %v1175_v24 = vadd.f32 %v1174_v22, %v1173_v20 }
 0x146   :  { %v721_v26 = vadd.f32 %v1175_v24, %v1147_v21 }
 0x156   :  { %v1192_v28 = vpop.f32.mrb[24].mxu0 }
 0x157   :  { %v1193_v29 = vpop.f32.mrb[25].mxu0 }
 0x158   :  { %v1220_v30 = vpop.f32.mrb[24].mxu1  ;;  %v1194_v31 = vadd.f32 %v1193_v29, %v1192_v28  ;;  %v1195_v32 = vpop.f32.mrb[26].mxu0 }
 0x159   :  { %v1221_v33 = vpop.f32.mrb[25].mxu1  ;;  %v1196_v34 = vpop.f32.mrb[27].mxu0 }
 0x15a   :  { %v1222_v35 = vadd.f32 %v1221_v33, %v1220_v30  ;;  %v1223_v36 = vpop.f32.mrb[26].mxu1  ;;  %v1197_v37 = vadd.f32 %v1196_v34, %v1195_v32 }
 0x15b   :  { %v1224_v38 = vpop.f32.mrb[27].mxu1 }
 0x15c   :  { %v861_v40 = vadd.f32 %v1222_v35, %v1194_v31  ;;  %v1225_v43 = vadd.f32 %v1224_v38, %v1223_v36 }
 0x15e   :  { %v879_v44 = vmax.f32 %v710_v7, %v861_v40  ;;  %v864_v46 = vadd.f32 %v1225_v43, %v1197_v37  ;;  %v1198_v47 = vpop.f32.mrb[28].mxu0 }
 0x15f   :  { %v1199_v49 = vpop.f32.mrb[29].mxu0 }
 0x160   :  { %v883_v50 = vmax.f32 %v875_v41, %v879_v44  ;;  %v880_v51 = vmax.f32 %v713_v9, %v864_v46  ;;  %v1226_v52 = vpop.f32.mrb[28].mxu1  ;;  %v1200_v53 = vadd.f32 %v1199_v49, %v1198_v47  ;;  %v1201_v54 = vpop.f32.mrb[30].mxu0 }
 0x161   :  { %v1227_v56 = vpop.f32.mrb[29].mxu1  ;;  %v1202_v60 = vpop.f32.mrb[31].mxu0 }
 0x162   :  { %v894_v61 = vadd.f32 %v1007_v48, %v883_v50  ;;  %v884_v62 = vmax.f32 %v876_v45, %v880_v51  ;;  %v1228_v63 = vadd.f32 %v1227_v56, %v1226_v52  ;;  %v1229_v0 = vpop.f32.mrb[30].mxu1  ;;  %v1203_v1 = vadd.f32 %v1202_v60, %v1201_v54 }
 0x163   :  { %v1230_v2 = vpop.f32.mrb[31].mxu1 }
 0x164   :  { %v898_v3 = vmax.f32 %v894_v61, 0.0  ;;  %v895_v4 = vadd.f32 %v1007_v48, %v884_v62  ;;  %v869_v11 = vadd.f32 %v1228_v63, %v1200_v53  ;;  %v1231_v39 = vadd.f32 %v1230_v2, %v1229_v0 }
 0x166   :  { %903 = vst.msk [vmem:[%s1790_s3] sm:$0xff] %vm902_vm2, %v898_v3  ;;  %v899_v41 = vmax.f32 %v895_v4, 0.0  ;;  %v881_v5 = vmax.f32 %v718_v23, %v869_v11  ;;  %v872_v6 = vadd.f32 %v1231_v39, %v1203_v1 }
 0x168   :  { %904 = vst.msk [vmem:[%s1790_s3 + $0x8] sm:$0xff] %vm902_vm2, %v899_v41  ;;  %v885_v13 = vmax.f32 %v877_v57, %v881_v5  ;;  %v882_v42 = vmax.f32 %v721_v26, %v872_v6 }
 0x16a   :  { %v896_v45 = vadd.f32 %v1007_v48, %v885_v13  ;;  %v886_v7 = vmax.f32 %v878_v59, %v882_v42 }
 0x16c   :  { %v900_v8 = vmax.f32 %v896_v45, 0.0  ;;  %v897_v9 = vadd.f32 %v1007_v48, %v886_v7 }
 0x16e   :  { %905 = vst.msk [vmem:[%s1790_s3 + $0x10] sm:$0xff] %vm902_vm2, %v900_v8  ;;  %v901_v10 = vmax.f32 %v897_v9, 0.0 }
 0x170   :  { %906 = vst.msk [vmem:[%s1790_s3 + $0x18] sm:$0xff] %vm902_vm2, %v901_v10 }

// kernel: conv_and_fc_quan_forward.5
= control target key start
LH: loop header
LB: loop body
LE: loop exit
PB: predicated region body
PF: predicated region fallthrough
CT: control target
= control target key end

     0   :  { %v225_v36 = vlaneseq  ;;  %v2672_v37 = vmov 1966171168   ;;  %s3445_s0 = inlined_call_operand.vmem [shape: bf16[2,800], index: 0, kind: input, shape index: {}]   ;;  %s3446_s1 = inlined_call_operand.vmem [shape: bf16[800,500], index: 1, kind: input, shape index: {}]   ;;  %s3447_s2 = inlined_call_operand.vmem [shape: f32[1,500], index: 2, kind: input, shape index: {}]   ;;  %s3448_s3 = inlined_call_operand.vmem [shape: bf16[500,10], index: 3, kind: input, shape index: {}]   ;;  %s3449_s4 = inlined_call_operand.vmem [shape: f32[1,10], index: 4, kind: input, shape index: {}]   ;;  %s3450_s5 = inlined_call_operand.hbm [shape: f32[2,10], index: 5, kind: output, shape index: {}]  }
   0x1   :  { %v2315_v0 = vld [vmem:[%s3446_s1 + $0x4] ss:$16 sps:$4 sm:$0xff]   ;;  %v2317_v1 = vld [vmem:[%s3446_s1 + $0xc] ss:$16 sps:$4 sm:$0xff]   ;;  %v2319_v2 = vld [vmem:[%s3446_s1] ss:$16 sps:$4 sm:$0xff]   ;;  %v248_v38 = vunpack.c.l.s4 %v2672_v37 }
   0x2   :  { %1304 = vmatprep.subr.bf16.mxu0 %v2315_v0  ;;  %v2320_v3 = vld [vmem:[%s3446_s1 + $0x8] ss:$16 sps:$4 sm:$0xff]   ;;  %1468 = vmatprep.subr.bf16.mxu1 %v2317_v1  ;;  %v2321_v4 = vld [vmem:[%s3446_s1 + $0x24] ss:$16 sps:$4 sm:$0xff]   ;;  %v2323_v5 = vld [vmem:[%s3446_s1 + $0x2c] ss:$16 sps:$4 sm:$0xff]  }
   0x3   :  { %1305 = vmatpush1.bf16.msra.mxu0 %v2319_v2  ;;  %1469 = vmatpush1.bf16.msra.mxu1 %v2320_v3  ;;  %v2325_v6 = vld [vmem:[%s3446_s1 + $0x20] ss:$16 sps:$4 sm:$0xff]   ;;  %v2326_v7 = vld [vmem:[%s3446_s1 + $0x28] ss:$16 sps:$4 sm:$0xff]   ;;  %v2327_v8 = vld [vmem:[%s3446_s1 + $0x44] ss:$16 sps:$4 sm:$0xff]   ;;  %v249_v43 = vunpack.c.0.s8 %v248_v38 }
   0x4   :  { %1306 = vmatprep.subr.bf16.mxu0 %v2321_v4  ;;  %1470 = vmatprep.subr.bf16.mxu1 %v2323_v5  ;;  %v2329_v9 = vld [vmem:[%s3446_s1 + $0x4c] ss:$16 sps:$4 sm:$0xff]   ;;  %v2331_v10 = vld [vmem:[%s3446_s1 + $0x40] ss:$16 sps:$4 sm:$0xff]   ;;  %v2332_v11 = vld [vmem:[%s3446_s1 + $0x48] ss:$16 sps:$4 sm:$0xff]  }
   0x5   :  { %v2333_v12 = vld [vmem:[%s3446_s1 + $0x64] ss:$16 sps:$4 sm:$0xff]   ;;  %v2335_v13 = vld [vmem:[%s3446_s1 + $0x6c] ss:$16 sps:$4 sm:$0xff]   ;;  %v2337_v14 = vld [vmem:[%s3446_s1 + $0x60] ss:$16 sps:$4 sm:$0xff]  }
   0x6   :  { %v2338_v15 = vld [vmem:[%s3446_s1 + $0x68] ss:$16 sps:$4 sm:$0xff]   ;;  %v2339_v16 = vld [vmem:[%s3446_s1 + $0x84] ss:$16 sps:$4 sm:$0xff]   ;;  %v2341_v17 = vld [vmem:[%s3446_s1 + $0x8c] ss:$16 sps:$4 sm:$0xff]  }
   0x7   :  { %1307 = vmatpush1.bf16.msra.mxu0 %v2325_v6  ;;  %1471 = vmatpush1.bf16.msra.mxu1 %v2326_v7  ;;  %v2343_v18 = vld [vmem:[%s3446_s1 + $0x80] ss:$16 sps:$4 sm:$0xff]   ;;  %v2344_v19 = vld [vmem:[%s3446_s1 + $0x88] ss:$16 sps:$4 sm:$0xff]   ;;  %v2345_v20 = vld [vmem:[%s3446_s1 + $0xa4] ss:$16 sps:$4 sm:$0xff]  }
   0x8   :  { %1308 = vmatprep.subr.bf16.mxu0 %v2327_v8  ;;  %1472 = vmatprep.subr.bf16.mxu1 %v2329_v9  ;;  %v2347_v21 = vld [vmem:[%s3446_s1 + $0xac] ss:$16 sps:$4 sm:$0xff]   ;;  %v2349_v22 = vld [vmem:[%s3446_s1 + $0xa0] ss:$16 sps:$4 sm:$0xff]   ;;  %v2350_v23 = vld [vmem:[%s3446_s1 + $0xa8] ss:$16 sps:$4 sm:$0xff]  }
   0x9   :  { %v2351_v24 = vld [vmem:[%s3446_s1 + $0xc4] ss:$16 sps:$4 sm:$0xff]   ;;  %v2353_v25 = vld [vmem:[%s3446_s1 + $0xcc] ss:$16 sps:$4 sm:$0xff]   ;;  %v2355_v26 = vld [vmem:[%s3446_s1 + $0xc0] ss:$16 sps:$4 sm:$0xff]  }
   0xa   :  { %v2356_v27 = vld [vmem:[%s3446_s1 + $0xc8] ss:$16 sps:$4 sm:$0xff]   ;;  %v2357_v28 = vld [vmem:[%s3446_s1 + $0xe4] ss:$16 sps:$4 sm:$0xff]   ;;  %v2359_v29 = vld [vmem:[%s3446_s1 + $0xec] ss:$16 sps:$4 sm:$0xff]  }
   0xb   :  { %1309 = vmatpush1.bf16.msra.mxu0 %v2331_v10  ;;  %1473 = vmatpush1.bf16.msra.mxu1 %v2332_v11  ;;  %v2361_v30 = vld [vmem:[%s3446_s1 + $0xe0] ss:$16 sps:$4 sm:$0xff]   ;;  %v2362_v31 = vld [vmem:[%s3446_s1 + $0xe8] ss:$16 sps:$4 sm:$0xff]   ;;  %v2363_v32 = vld [vmem:[%s3446_s1 + $0x104] ss:$16 sps:$4 sm:$0xff]  }
   0xc   :  { %1310 = vmatprep.subr.bf16.mxu0 %v2333_v12  ;;  %1474 = vmatprep.subr.bf16.mxu1 %v2335_v13  ;;  %v2365_v33 = vld [vmem:[%s3446_s1 + $0x10c] ss:$16 sps:$4 sm:$0xff]   ;;  %v2367_v34 = vld [vmem:[%s3446_s1 + $0x100] ss:$16 sps:$4 sm:$0xff]   ;;  %v2368_v35 = vld [vmem:[%s3446_s1 + $0x108] ss:$16 sps:$4 sm:$0xff]  }
   0xd   :  { %v2369_v39 = vld [vmem:[%s3446_s1 + $0x124] ss:$16 sps:$4 sm:$0xff]   ;;  %v2371_v40 = vld [vmem:[%s3446_s1 + $0x12c] ss:$16 sps:$4 sm:$0xff]   ;;  %v2373_v41 = vld [vmem:[%s3446_s1 + $0x120] ss:$16 sps:$4 sm:$0xff]  }
   0xe   :  { %v2822_v42 = vshrl.u32 %v225_v36, 7  ;;  %v2374_v44 = vld [vmem:[%s3446_s1 + $0x128] ss:$16 sps:$4 sm:$0xff]   ;;  %v2375_v45 = vld [vmem:[%s3446_s1 + $0x144] ss:$16 sps:$4 sm:$0xff]  }
   0xf   :  { %1311 = vmatpush1.bf16.msra.mxu0 %v2337_v14  ;;  %1475 = vmatpush1.bf16.msra.mxu1 %v2338_v15  ;;  %v2377_v46 = vld [vmem:[%s3446_s1 + $0x14c] ss:$16 sps:$4 sm:$0xff]   ;;  %v2379_v47 = vld [vmem:[%s3446_s1 + $0x140] ss:$16 sps:$4 sm:$0xff]   ;;  %v2380_v48 = vld [vmem:[%s3446_s1 + $0x148] ss:$16 sps:$4 sm:$0xff]  }
  0x10   :  { %1312 = vmatprep.subr.bf16.mxu0 %v2339_v16  ;;  %1476 = vmatprep.subr.bf16.mxu1 %v2341_v17  ;;  %v252_v49 = vsub.s32 %v249_v43, %v2822_v42  ;;  %v2381_v50 = vld [vmem:[%s3446_s1 + $0x164] ss:$16 sps:$4 sm:$0xff]   ;;  %v2383_v51 = vld [vmem:[%s3446_s1 + $0x16c] ss:$16 sps:$4 sm:$0xff]   ;;  %v2385_v53 = vld [vmem:[%s3446_s1 + $0x160] ss:$16 sps:$4 sm:$0xff]  }
  0x11   :  { %v22_v52 = vld [vmem:[%s3445_s0] sm:$0x7f]  ;;  %v2386_v55 = vld [vmem:[%s3446_s1 + $0x168] ss:$16 sps:$4 sm:$0xff]   ;;  %v2389_v57 = vld [vmem:[%s3446_s1 + $0x18c] ss:$16 sps:$4 sm:$0xff]  }
  0x12   :  { %v253_v54 = vrot.slane %v22_v52, %v252_v49  ;;  %v2387_v56 = vld [vmem:[%s3446_s1 + $0x184] ss:$16 sps:$4 sm:$0xff]   ;;  %v2391_v59 = vld [vmem:[%s3446_s1 + $0x180] ss:$16 sps:$4 sm:$0xff]   ;;  %v2392_v61 = vld [vmem:[%s3446_s1 + $0x188] ss:$16 sps:$4 sm:$0xff]   ;;  %v246_v8 = vcombine.high %v22_v52, %v22_v52 }
  0x13   :  { %1313 = vmatpush1.bf16.msra.mxu0 %v2343_v18  ;;  %1477 = vmatpush1.bf16.msra.mxu1 %v2344_v19  ;;  %v2393_v62 = vld [vmem:[%s3446_s1 + $0x1a4] ss:$16 sps:$4 sm:$0xff]   ;;  %v2395_v63 = vld [vmem:[%s3446_s1 + $0x1ac] ss:$16 sps:$4 sm:$0xff]   ;;  %v2397_v0 = vld [vmem:[%s3446_s1 + $0x1a0] ss:$16 sps:$4 sm:$0xff]  }
  0x14   :  { %1314 = vmatprep.subr.bf16.mxu0 %v2345_v20  ;;  %1478 = vmatprep.subr.bf16.mxu1 %v2347_v21  ;;  %v261_v58 = vcombine.high %v253_v54, %v253_v54  ;;  %v2398_v1 = vld [vmem:[%s3446_s1 + $0x1a8] ss:$16 sps:$4 sm:$0xff]   ;;  %v2399_v2 = vld [vmem:[%s3446_s1 + $0x1c4] ss:$16 sps:$4 sm:$0xff]   ;;  %v2401_v3 = vld [vmem:[%s3446_s1 + $0x1cc] ss:$16 sps:$4 sm:$0xff]   ;;  %v260_v11 = vrot.slane %v246_v8, %v252_v49  ;;  %v2912_v16 = vrot.slane %v253_v54, %v252_v49 }
  0x15   :  { %v2403_v4 = vld [vmem:[%s3446_s1 + $0x1c0] ss:$16 sps:$4 sm:$0xff]   ;;  %v2404_v5 = vld [vmem:[%s3446_s1 + $0x1c8] ss:$16 sps:$4 sm:$0xff]   ;;  %v2405_v6 = vld [vmem:[%s3446_s1 + $0x1e4] ss:$16 sps:$4 sm:$0xff]  }
  0x16   :  { %v283_v60 = vrot.slane %v261_v58, %v252_v49  ;;  %v2407_v7 = vld [vmem:[%s3446_s1 + $0x1ec] ss:$16 sps:$4 sm:$0xff]   ;;  %v2409_v9 = vld [vmem:[%s3446_s1 + $0x1e0] ss:$16 sps:$4 sm:$0xff]   ;;  %v2410_v10 = vld [vmem:[%s3446_s1 + $0x1e8] ss:$16 sps:$4 sm:$0xff]   ;;  %v262_v14 = vcombine.high %v260_v11, %v260_v11  ;;  %v2919_v19 = vrot.slane %v260_v11, %v252_v49 }
  0x17   :  { %1315 = vmatpush1.bf16.msra.mxu0 %v2349_v22  ;;  %1479 = vmatpush1.bf16.msra.mxu1 %v2350_v23  ;;  %v2413_v12 = vld [vmem:[%s3446_s1 + $0x204] ss:$16 sps:$4 sm:$0xff]   ;;  %v2416_v13 = vld [vmem:[%s3446_s1 + $0x20c] ss:$16 sps:$4 sm:$0xff]   ;;  %v2411_v15 = vld [vmem:[%s3446_s1 + $0x200] ss:$16 sps:$4 sm:$0xff]  }
  0x18   :  { %1316 = vmatprep.subr.bf16.mxu0 %v2351_v24  ;;  %1480 = vmatprep.subr.bf16.mxu1 %v2353_v25  ;;  %v2414_v17 = vld [vmem:[%s3446_s1 + $0x208] ss:$16 sps:$4 sm:$0xff]   ;;  %v2917_v18 = vrot.slane %v262_v14, %v252_v49  ;;  %v2419_v20 = vld [vmem:[%s3446_s1 + $0x224] ss:$16 sps:$4 sm:$0xff]   ;;  %v2422_v21 = vld [vmem:[%s3446_s1 + $0x22c] ss:$16 sps:$4 sm:$0xff]   ;;  %v293_v22 = vcombine.high %v283_v60, %v283_v60 }
  0x19   :  { %1336 = vmatprep.mubr.bf16.mxu0 %v283_v60  ;;  %1500 = vmatprep.mubr.bf16.mxu1 %v283_v60  ;;  %v2417_v23 = vld [vmem:[%s3446_s1 + $0x220] ss:$16 sps:$4 sm:$0xff]   ;;  %v2420_v24 = vld [vmem:[%s3446_s1 + $0x228] ss:$16 sps:$4 sm:$0xff]   ;;  %v2425_v25 = vld [vmem:[%s3446_s1 + $0x244] ss:$16 sps:$4 sm:$0xff]  }
  0x1a   :  { %v2438_v36 = vld [vmem:[%s3446_s1 + $0x288] ss:$16 sps:$4 sm:$0xff]   ;;  %v2443_v37 = vld [vmem:[%s3446_s1 + $0x2a4] ss:$16 sps:$4 sm:$0xff]   ;;  %v2446_v38 = vld [vmem:[%s3446_s1 + $0x2ac] ss:$16 sps:$4 sm:$0xff]  }
  0x1b   :  { %1317 = vmatpush1.bf16.msra.mxu0 %v2355_v26  ;;  %1481 = vmatpush1.bf16.msra.mxu1 %v2356_v27  ;;  %v2428_v26 = vld [vmem:[%s3446_s1 + $0x24c] ss:$16 sps:$4 sm:$0xff]   ;;  %v2423_v27 = vld [vmem:[%s3446_s1 + $0x240] ss:$16 sps:$4 sm:$0xff]   ;;  %v2456_v49 = vld [vmem:[%s3446_s1 + $0x2e8] ss:$16 sps:$4 sm:$0xff]  }
  0x1c   :  { %1318 = vmatprep.subr.bf16.mxu0 %v2357_v28  ;;  %1482 = vmatprep.subr.bf16.mxu1 %v2359_v29  ;;  %v2426_v28 = vld [vmem:[%s3446_s1 + $0x248] ss:$16 sps:$4 sm:$0xff]   ;;  %v2431_v29 = vld [vmem:[%s3446_s1 + $0x264] ss:$16 sps:$4 sm:$0xff]   ;;  %v2452_v43 = vld [vmem:[%s3446_s1 + $0x2cc] ss:$16 sps:$4 sm:$0xff]  }
  0x1d   :  { %v2459_v52 = vld [vmem:[%s3446_s1 + $0x300] ss:$16 sps:$4 sm:$0xff]   ;;  %v2467_v54 = vld [vmem:[%s3446_s1 + $0x324] ss:$16 sps:$4 sm:$0xff]   ;;  %v2500_v11 = vld [vmem:[%s3446_s1 + $0x3cc] ss:$16 sps:$4 sm:$0xff]  }
  0x1e   :  { %v2473_v58 = vld [vmem:[%s3446_s1 + $0x344] ss:$16 sps:$4 sm:$0xff]   ;;  %v2471_v60 = vld [vmem:[%s3446_s1 + $0x340] ss:$16 sps:$4 sm:$0xff]  }
  0x1f   :  { %1319 = vmatpush1.bf16.msra.mxu0 %v2361_v30  ;;  %1483 = vmatpush1.bf16.msra.mxu1 %v2362_v31  ;;  %v2434_v30 = vld [vmem:[%s3446_s1 + $0x26c] ss:$16 sps:$4 sm:$0xff]   ;;  %v2429_v31 = vld [vmem:[%s3446_s1 + $0x260] ss:$16 sps:$4 sm:$0xff]   ;;  %v2503_v14 = vld [vmem:[%s3446_s1 + $0x3e4] ss:$16 sps:$4 sm:$0xff]  }
  0x20   :  { %1320 = vmatprep.subr.bf16.mxu0 %v2363_v32  ;;  %1484 = vmatprep.subr.bf16.mxu1 %v2365_v33  ;;  %v2432_v32 = vld [vmem:[%s3446_s1 + $0x268] ss:$16 sps:$4 sm:$0xff]   ;;  %v2437_v33 = vld [vmem:[%s3446_s1 + $0x284] ss:$16 sps:$4 sm:$0xff]   ;;  %v2489_v8 = vld [vmem:[%s3446_s1 + $0x3a0] ss:$16 sps:$4 sm:$0xff]  }
  0x23   :  { %1321 = vmatpush1.bf16.msra.mxu0 %v2367_v34  ;;  %1485 = vmatpush1.bf16.msra.mxu1 %v2368_v35  ;;  %v2440_v34 = vld [vmem:[%s3446_s1 + $0x28c] ss:$16 sps:$4 sm:$0xff]   ;;  %v2435_v35 = vld [vmem:[%s3446_s1 + $0x280] ss:$16 sps:$4 sm:$0xff]  }
  0x24   :  { %1322 = vmatprep.subr.bf16.mxu0 %v2369_v39  ;;  %1486 = vmatprep.subr.bf16.mxu1 %v2371_v40  ;;  %v2441_v39 = vld [vmem:[%s3446_s1 + $0x2a0] ss:$16 sps:$4 sm:$0xff]   ;;  %v2444_v40 = vld [vmem:[%s3446_s1 + $0x2a8] ss:$16 sps:$4 sm:$0xff]  }
  0x27   :  { %1323 = vmatpush1.bf16.msra.mxu0 %v2373_v41  ;;  %1487 = vmatpush1.bf16.msra.mxu1 %v2374_v44  ;;  %v2449_v41 = vld [vmem:[%s3446_s1 + $0x2c4] ss:$16 sps:$4 sm:$0xff]   ;;  %v2447_v44 = vld [vmem:[%s3446_s1 + $0x2c0] ss:$16 sps:$4 sm:$0xff]  }
  0x28   :  { %1324 = vmatprep.subr.bf16.mxu0 %v2375_v45  ;;  %1488 = vmatprep.subr.bf16.mxu1 %v2377_v46  ;;  %v2450_v45 = vld [vmem:[%s3446_s1 + $0x2c8] ss:$16 sps:$4 sm:$0xff]   ;;  %v2455_v46 = vld [vmem:[%s3446_s1 + $0x2e4] ss:$16 sps:$4 sm:$0xff]  }
  0x2b   :  { %1325 = vmatpush1.bf16.msra.mxu0 %v2379_v47  ;;  %1489 = vmatpush1.bf16.msra.mxu1 %v2380_v48  ;;  %v2458_v47 = vld [vmem:[%s3446_s1 + $0x2ec] ss:$16 sps:$4 sm:$0xff]   ;;  %v2453_v48 = vld [vmem:[%s3446_s1 + $0x2e0] ss:$16 sps:$4 sm:$0xff]  }
  0x2c   :  { %1326 = vmatprep.subr.bf16.mxu0 %v2381_v50  ;;  %1490 = vmatprep.subr.bf16.mxu1 %v2383_v51  ;;  %v2461_v50 = vld [vmem:[%s3446_s1 + $0x304] ss:$16 sps:$4 sm:$0xff]   ;;  %v2464_v51 = vld [vmem:[%s3446_s1 + $0x30c] ss:$16 sps:$4 sm:$0xff]  }
  0x2f   :  { %1327 = vmatpush1.bf16.msra.mxu0 %v2385_v53  ;;  %1491 = vmatpush1.bf16.msra.mxu1 %v2386_v55  ;;  %v2462_v53 = vld [vmem:[%s3446_s1 + $0x308] ss:$16 sps:$4 sm:$0xff]   ;;  %v2470_v55 = vld [vmem:[%s3446_s1 + $0x32c] ss:$16 sps:$4 sm:$0xff]  }
  0x30   :  { %1328 = vmatprep.subr.bf16.mxu0 %v2387_v56  ;;  %1492 = vmatprep.subr.bf16.mxu1 %v2389_v57  ;;  %v2465_v56 = vld [vmem:[%s3446_s1 + $0x320] ss:$16 sps:$4 sm:$0xff]   ;;  %v2468_v57 = vld [vmem:[%s3446_s1 + $0x328] ss:$16 sps:$4 sm:$0xff]  }
  0x33   :  { %1329 = vmatpush1.bf16.msra.mxu0 %v2391_v59  ;;  %1493 = vmatpush1.bf16.msra.mxu1 %v2392_v61  ;;  %v2476_v59 = vld [vmem:[%s3446_s1 + $0x34c] ss:$16 sps:$4 sm:$0xff]   ;;  %v2474_v61 = vld [vmem:[%s3446_s1 + $0x348] ss:$16 sps:$4 sm:$0xff]  }
  0x34   :  { %1330 = vmatprep.subr.bf16.mxu0 %v2393_v62  ;;  %1494 = vmatprep.subr.bf16.mxu1 %v2395_v63  ;;  %v2479_v62 = vld [vmem:[%s3446_s1 + $0x364] ss:$16 sps:$4 sm:$0xff]   ;;  %v2482_v63 = vld [vmem:[%s3446_s1 + $0x36c] ss:$16 sps:$4 sm:$0xff]  }
  0x37   :  { %1331 = vmatpush1.bf16.msra.mxu0 %v2397_v0  ;;  %1495 = vmatpush1.bf16.msra.mxu1 %v2398_v1  ;;  %v2477_v0 = vld [vmem:[%s3446_s1 + $0x360] ss:$16 sps:$4 sm:$0xff]   ;;  %v2480_v1 = vld [vmem:[%s3446_s1 + $0x368] ss:$16 sps:$4 sm:$0xff]  }
  0x38   :  { %1332 = vmatprep.subr.bf16.mxu0 %v2399_v2  ;;  %1496 = vmatprep.subr.bf16.mxu1 %v2401_v3  ;;  %v2485_v2 = vld [vmem:[%s3446_s1 + $0x384] ss:$16 sps:$4 sm:$0xff]   ;;  %v2488_v3 = vld [vmem:[%s3446_s1 + $0x38c] ss:$16 sps:$4 sm:$0xff]  }
  0x3b   :  { %1333 = vmatpush1.bf16.msra.mxu0 %v2403_v4  ;;  %1497 = vmatpush1.bf16.msra.mxu1 %v2404_v5  ;;  %v2483_v4 = vld [vmem:[%s3446_s1 + $0x380] ss:$16 sps:$4 sm:$0xff]   ;;  %v2486_v5 = vld [vmem:[%s3446_s1 + $0x388] ss:$16 sps:$4 sm:$0xff]  }
  0x3c   :  { %1334 = vmatprep.subr.bf16.mxu0 %v2405_v6  ;;  %1498 = vmatprep.subr.bf16.mxu1 %v2407_v7  ;;  %v2491_v6 = vld [vmem:[%s3446_s1 + $0x3a4] ss:$16 sps:$4 sm:$0xff]   ;;  %v2494_v7 = vld [vmem:[%s3446_s1 + $0x3ac] ss:$16 sps:$4 sm:$0xff]  }
  0x3f   :  { %1335 = vmatpush1.bf16.msra.mxu0 %v2409_v9  ;;  %1499 = vmatpush1.bf16.msra.mxu1 %v2410_v10  ;;  %v2492_v9 = vld [vmem:[%s3446_s1 + $0x3a8] ss:$16 sps:$4 sm:$0xff]   ;;  %v2497_v10 = vld [vmem:[%s3446_s1 + $0x3c4] ss:$16 sps:$4 sm:$0xff]  }
  0x40   :  { %1345 = vmatprep.subr.bf16.mxu0 %v2413_v12  ;;  %1509 = vmatprep.subr.bf16.mxu1 %v2416_v13  ;;  %v2495_v12 = vld [vmem:[%s3446_s1 + $0x3c0] ss:$16 sps:$4 sm:$0xff]   ;;  %v2498_v13 = vld [vmem:[%s3446_s1 + $0x3c8] ss:$16 sps:$4 sm:$0xff]  }
  0x42   :  { %1337 = vmatmul.mubr.bf16.vlgmr.msra.gmra.mrb[0].mxu0 %v2912_v16  ;;  %1501 = vmatmul.mubr.bf16.vlgmr.msra.gmra.mrb[0].mxu1 %v2912_v16 }
  0x43   :  { %1346 = vmatpush1.bf16.msra.mxu0 %v2411_v15  ;;  %1510 = vmatpush1.bf16.msra.mxu1 %v2414_v17  ;;  %v2506_v15 = vld [vmem:[%s3446_s1 + $0x3ec] ss:$16 sps:$4 sm:$0xff]   ;;  %v2501_v17 = vld [vmem:[%s3446_s1 + $0x3e0] ss:$16 sps:$4 sm:$0xff]  }
  0x44   :  { %1347 = vmatprep.subr.bf16.mxu0 %v2419_v20  ;;  %1511 = vmatprep.subr.bf16.mxu1 %v2422_v21  ;;  %v2504_v20 = vld [vmem:[%s3446_s1 + $0x3e8] ss:$16 sps:$4 sm:$0xff]   ;;  %v2509_v21 = vld [vmem:[%s3446_s1 + $0x404] ss:$16 sps:$4 sm:$0xff]  }
  0x45   :  { %1377 = vmatprep.mubr.bf16.mxu0 %v293_v22  ;;  %1541 = vmatprep.mubr.bf16.mxu1 %v293_v22  ;;  %v2512_v22 = vld [vmem:[%s3446_s1 + $0x40c] ss:$16 sps:$4 sm:$0xff]  }
  0x47   :  { %1348 = vmatpush1.bf16.msra.mxu0 %v2417_v23  ;;  %1512 = vmatpush1.bf16.msra.mxu1 %v2420_v24  ;;  %v2507_v23 = vld [vmem:[%s3446_s1 + $0x400] ss:$16 sps:$4 sm:$0xff]   ;;  %v291_v24 = vcombine.high %v2912_v16, %v2912_v16 }
  0x48   :  { %1349 = vmatprep.subr.bf16.mxu0 %v2425_v25  ;;  %1513 = vmatprep.subr.bf16.mxu1 %v2428_v26  ;;  %v2510_v25 = vld [vmem:[%s3446_s1 + $0x408] ss:$16 sps:$4 sm:$0xff]   ;;  %v2515_v26 = vld [vmem:[%s3446_s1 + $0x424] ss:$16 sps:$4 sm:$0xff]   ;;  %v2513_v16 = vld [vmem:[%s3446_s1 + $0x420] ss:$16 sps:$4 sm:$0xff]  }
  0x4b   :  { %1350 = vmatpush1.bf16.msra.mxu0 %v2423_v27  ;;  %1514 = vmatpush1.bf16.msra.mxu1 %v2426_v28  ;;  %v2518_v27 = vld [vmem:[%s3446_s1 + $0x42c] ss:$16 sps:$4 sm:$0xff]   ;;  %v2516_v28 = vld [vmem:[%s3446_s1 + $0x428] ss:$16 sps:$4 sm:$0xff]  }
  0x4c   :  { %1351 = vmatprep.subr.bf16.mxu0 %v2431_v29  ;;  %1515 = vmatprep.subr.bf16.mxu1 %v2434_v30  ;;  %v2521_v29 = vld [vmem:[%s3446_s1 + $0x444] ss:$16 sps:$4 sm:$0xff]   ;;  %v2524_v30 = vld [vmem:[%s3446_s1 + $0x44c] ss:$16 sps:$4 sm:$0xff]  }
  0x4f   :  { %1352 = vmatpush1.bf16.msra.mxu0 %v2429_v31  ;;  %1516 = vmatpush1.bf16.msra.mxu1 %v2432_v32  ;;  %v2519_v31 = vld [vmem:[%s3446_s1 + $0x440] ss:$16 sps:$4 sm:$0xff]   ;;  %v2522_v32 = vld [vmem:[%s3446_s1 + $0x448] ss:$16 sps:$4 sm:$0xff]  }
  0x50   :  { %1353 = vmatprep.subr.bf16.mxu0 %v2437_v33  ;;  %1517 = vmatprep.subr.bf16.mxu1 %v2440_v34  ;;  %v2527_v33 = vld [vmem:[%s3446_s1 + $0x464] ss:$16 sps:$4 sm:$0xff]   ;;  %v2530_v34 = vld [vmem:[%s3446_s1 + $0x46c] ss:$16 sps:$4 sm:$0xff]  }
  0x53   :  { %1354 = vmatpush1.bf16.msra.mxu0 %v2435_v35  ;;  %1518 = vmatpush1.bf16.msra.mxu1 %v2438_v36  ;;  %v2528_v35 = vld [vmem:[%s3446_s1 + $0x468] ss:$16 sps:$4 sm:$0xff]   ;;  %v2533_v36 = vld [vmem:[%s3446_s1 + $0x484] ss:$16 sps:$4 sm:$0xff]  }
  0x54   :  { %1355 = vmatprep.subr.bf16.mxu0 %v2443_v37  ;;  %1519 = vmatprep.subr.bf16.mxu1 %v2446_v38  ;;  %v2536_v37 = vld [vmem:[%s3446_s1 + $0x48c] ss:$16 sps:$4 sm:$0xff]   ;;  %v2531_v38 = vld [vmem:[%s3446_s1 + $0x480] ss:$16 sps:$4 sm:$0xff]  }
  0x57   :  { %1356 = vmatpush1.bf16.msra.mxu0 %v2441_v39  ;;  %1520 = vmatpush1.bf16.msra.mxu1 %v2444_v40  ;;  %v2534_v39 = vld [vmem:[%s3446_s1 + $0x488] ss:$16 sps:$4 sm:$0xff]   ;;  %v2539_v40 = vld [vmem:[%s3446_s1 + $0x4a4] ss:$16 sps:$4 sm:$0xff]  }
  0x58   :  { %1357 = vmatprep.subr.bf16.mxu0 %v2449_v41  ;;  %1521 = vmatprep.subr.bf16.mxu1 %v2452_v43  ;;  %v2542_v41 = vld [vmem:[%s3446_s1 + $0x4ac] ss:$16 sps:$4 sm:$0xff]   ;;  %v2537_v43 = vld [vmem:[%s3446_s1 + $0x4a0] ss:$16 sps:$4 sm:$0xff]  }
  0x5b   :  { %1358 = vmatpush1.bf16.msra.mxu0 %v2447_v44  ;;  %1522 = vmatpush1.bf16.msra.mxu1 %v2450_v45  ;;  %v2540_v44 = vld [vmem:[%s3446_s1 + $0x4a8] ss:$16 sps:$4 sm:$0xff]   ;;  %v2545_v45 = vld [vmem:[%s3446_s1 + $0x4c4] ss:$16 sps:$4 sm:$0xff]  }
  0x5c   :  { %1359 = vmatprep.subr.bf16.mxu0 %v2455_v46  ;;  %1523 = vmatprep.subr.bf16.mxu1 %v2458_v47  ;;  %v2548_v46 = vld [vmem:[%s3446_s1 + $0x4cc] ss:$16 sps:$4 sm:$0xff]   ;;  %v2543_v47 = vld [vmem:[%s3446_s1 + $0x4c0] ss:$16 sps:$4 sm:$0xff]  }
  0x5f   :  { %1360 = vmatpush1.bf16.msra.mxu0 %v2453_v48  ;;  %1524 = vmatpush1.bf16.msra.mxu1 %v2456_v49  ;;  %v2546_v48 = vld [vmem:[%s3446_s1 + $0x4c8] ss:$16 sps:$4 sm:$0xff]   ;;  %v2551_v49 = vld [vmem:[%s3446_s1 + $0x4e4] ss:$16 sps:$4 sm:$0xff]  }
  0x60   :  { %1361 = vmatprep.subr.bf16.mxu0 %v2461_v50  ;;  %1525 = vmatprep.subr.bf16.mxu1 %v2464_v51  ;;  %v2554_v50 = vld [vmem:[%s3446_s1 + $0x4ec] ss:$16 sps:$4 sm:$0xff]   ;;  %v2549_v51 = vld [vmem:[%s3446_s1 + $0x4e0] ss:$16 sps:$4 sm:$0xff]  }
  0x63   :  { %1362 = vmatpush1.bf16.msra.mxu0 %v2459_v52  ;;  %1526 = vmatpush1.bf16.msra.mxu1 %v2462_v53  ;;  %v2552_v52 = vld [vmem:[%s3446_s1 + $0x4e8] ss:$16 sps:$4 sm:$0xff]   ;;  %v2557_v53 = vld [vmem:[%s3446_s1 + $0x504] ss:$16 sps:$4 sm:$0xff]  }
  0x64   :  { %1363 = vmatprep.subr.bf16.mxu0 %v2467_v54  ;;  %1527 = vmatprep.subr.bf16.mxu1 %v2470_v55  ;;  %v2560_v54 = vld [vmem:[%s3446_s1 + $0x50c] ss:$16 sps:$4 sm:$0xff]   ;;  %v2555_v55 = vld [vmem:[%s3446_s1 + $0x500] ss:$16 sps:$4 sm:$0xff]  }
  0x67   :  { %1364 = vmatpush1.bf16.msra.mxu0 %v2465_v56  ;;  %1528 = vmatpush1.bf16.msra.mxu1 %v2468_v57  ;;  %v2558_v56 = vld [vmem:[%s3446_s1 + $0x508] ss:$16 sps:$4 sm:$0xff]   ;;  %v2563_v57 = vld [vmem:[%s3446_s1 + $0x524] ss:$16 sps:$4 sm:$0xff]  }
  0x68   :  { %1365 = vmatprep.subr.bf16.mxu0 %v2473_v58  ;;  %1529 = vmatprep.subr.bf16.mxu1 %v2476_v59  ;;  %v2566_v58 = vld [vmem:[%s3446_s1 + $0x52c] ss:$16 sps:$4 sm:$0xff]  }
  0x6b   :  { %1366 = vmatpush1.bf16.msra.mxu0 %v2471_v60  ;;  %1530 = vmatpush1.bf16.msra.mxu1 %v2474_v61 }
  0x6c   :  { %1367 = vmatprep.subr.bf16.mxu0 %v2479_v62  ;;  %1531 = vmatprep.subr.bf16.mxu1 %v2482_v63 }
  0x6f   :  { %1368 = vmatpush1.bf16.msra.mxu0 %v2477_v0  ;;  %1532 = vmatpush1.bf16.msra.mxu1 %v2480_v1 }
  0x70   :  { %1369 = vmatprep.subr.bf16.mxu0 %v2485_v2  ;;  %1533 = vmatprep.subr.bf16.mxu1 %v2488_v3 }
  0x73   :  { %1370 = vmatpush1.bf16.msra.mxu0 %v2483_v4  ;;  %1534 = vmatpush1.bf16.msra.mxu1 %v2486_v5 }
  0x74   :  { %1371 = vmatprep.subr.bf16.mxu0 %v2491_v6  ;;  %1535 = vmatprep.subr.bf16.mxu1 %v2494_v7 }
  0x77   :  { %1372 = vmatpush1.bf16.msra.mxu0 %v2489_v8  ;;  %1536 = vmatpush1.bf16.msra.mxu1 %v2492_v9 }
  0x78   :  { %1373 = vmatprep.subr.bf16.mxu0 %v2497_v10  ;;  %1537 = vmatprep.subr.bf16.mxu1 %v2500_v11 }
  0x7b   :  { %1374 = vmatpush1.bf16.msra.mxu0 %v2495_v12  ;;  %1538 = vmatpush1.bf16.msra.mxu1 %v2498_v13 }
  0x7c   :  { %1375 = vmatprep.subr.bf16.mxu0 %v2503_v14  ;;  %1539 = vmatprep.subr.bf16.mxu1 %v2506_v15 }
  0x7f   :  { %1376 = vmatpush1.bf16.msra.mxu0 %v2501_v17  ;;  %1540 = vmatpush1.bf16.msra.mxu1 %v2504_v20 }
  0x80   :  { %1386 = vmatprep.subr.bf16.mxu0 %v2509_v21  ;;  %1550 = vmatprep.subr.bf16.mxu1 %v2512_v22 }
  0x82   :  { %1378 = vmatmul.mubr.bf16.vlgmr.msra.gmra.mrb[0].mxu0 %v291_v24  ;;  %1542 = vmatmul.mubr.bf16.vlgmr.msra.gmra.mrb[0].mxu1 %v291_v24 }
  0x83   :  { %1387 = vmatpush1.bf16.msra.mxu0 %v2507_v23  ;;  %1551 = vmatpush1.bf16.msra.mxu1 %v2510_v25 }
  0x84   :  { %1388 = vmatprep.subr.bf16.mxu0 %v2515_v26  ;;  %1552 = vmatprep.subr.bf16.mxu1 %v2518_v27 }
  0x85   :  { %1418 = vmatprep.mubr.bf16.mxu0 %v2917_v18  ;;  %1582 = vmatprep.mubr.bf16.mxu1 %v2917_v18  ;;  %v2525_v18 = vld [vmem:[%s3446_s1 + $0x460] ss:$16 sps:$4 sm:$0xff]  }
  0x87   :  { %1389 = vmatpush1.bf16.msra.mxu0 %v2513_v16  ;;  %1553 = vmatpush1.bf16.msra.mxu1 %v2516_v28 }
  0x88   :  { %1390 = vmatprep.subr.bf16.mxu0 %v2521_v29  ;;  %1554 = vmatprep.subr.bf16.mxu1 %v2524_v30 }
  0x8b   :  { %1391 = vmatpush1.bf16.msra.mxu0 %v2519_v31  ;;  %1555 = vmatpush1.bf16.msra.mxu1 %v2522_v32 }
  0x8c   :  { %1392 = vmatprep.subr.bf16.mxu0 %v2527_v33  ;;  %1556 = vmatprep.subr.bf16.mxu1 %v2530_v34 }
  0x8f   :  { %1393 = vmatpush1.bf16.msra.mxu0 %v2525_v18  ;;  %1557 = vmatpush1.bf16.msra.mxu1 %v2528_v35 }
  0x90   :  { %1394 = vmatprep.subr.bf16.mxu0 %v2533_v36  ;;  %1558 = vmatprep.subr.bf16.mxu1 %v2536_v37 }
  0x93   :  { %1395 = vmatpush1.bf16.msra.mxu0 %v2531_v38  ;;  %1559 = vmatpush1.bf16.msra.mxu1 %v2534_v39 }
  0x94   :  { %1396 = vmatprep.subr.bf16.mxu0 %v2539_v40  ;;  %1560 = vmatprep.subr.bf16.mxu1 %v2542_v41 }
  0x97   :  { %1397 = vmatpush1.bf16.msra.mxu0 %v2537_v43  ;;  %1561 = vmatpush1.bf16.msra.mxu1 %v2540_v44 }
  0x98   :  { %1398 = vmatprep.subr.bf16.mxu0 %v2545_v45  ;;  %1562 = vmatprep.subr.bf16.mxu1 %v2548_v46 }
  0x9b   :  { %1399 = vmatpush1.bf16.msra.mxu0 %v2543_v47  ;;  %1563 = vmatpush1.bf16.msra.mxu1 %v2546_v48 }
  0x9c   :  { %1400 = vmatprep.subr.bf16.mxu0 %v2551_v49  ;;  %1564 = vmatprep.subr.bf16.mxu1 %v2554_v50 }
  0x9f   :  { %1401 = vmatpush1.bf16.msra.mxu0 %v2549_v51  ;;  %1565 = vmatpush1.bf16.msra.mxu1 %v2552_v52 }
  0xa0   :  { %1402 = vmatprep.subr.bf16.mxu0 %v2557_v53  ;;  %1566 = vmatprep.subr.bf16.mxu1 %v2560_v54 }
  0xa1   :  { %10 = vsyncpa [#allocation3], 0  ;;  %v2561_v59 = vld [vmem:[%s3446_s1 + $0x520] ss:$16 sps:$4 sm:$0xff]   ;;  %v2564_v60 = vld [vmem:[%s3446_s1 + $0x528] ss:$16 sps:$4 sm:$0xff]   ;;  %v292_v34 = vcombine.high %v2919_v19, %v2919_v19 }
  0xa2   :  { %v2569_v61 = vld [vmem:[%s3446_s1 + $0x544] ss:$16 sps:$4 sm:$0xff]   ;;  %v2572_v62 = vld [vmem:[%s3446_s1 + $0x54c] ss:$16 sps:$4 sm:$0xff]   ;;  %v2567_v63 = vld [vmem:[%s3446_s1 + $0x540] ss:$16 sps:$4 sm:$0xff]  }
  0xa3   :  { %1403 = vmatpush1.bf16.msra.mxu0 %v2555_v55  ;;  %1567 = vmatpush1.bf16.msra.mxu1 %v2558_v56  ;;  %v2570_v0 = vld [vmem:[%s3446_s1 + $0x548] ss:$16 sps:$4 sm:$0xff]   ;;  %v2575_v1 = vld [vmem:[%s3446_s1 + $0x564] ss:$16 sps:$4 sm:$0xff]   ;;  %v2578_v2 = vld [vmem:[%s3446_s1 + $0x56c] ss:$16 sps:$4 sm:$0xff]  }
  0xa4   :  { %1404 = vmatprep.subr.bf16.mxu0 %v2563_v57  ;;  %1568 = vmatprep.subr.bf16.mxu1 %v2566_v58  ;;  %v2573_v3 = vld [vmem:[%s3446_s1 + $0x560] ss:$16 sps:$4 sm:$0xff]   ;;  %v2576_v4 = vld [vmem:[%s3446_s1 + $0x568] ss:$16 sps:$4 sm:$0xff]   ;;  %v2581_v5 = vld [vmem:[%s3446_s1 + $0x584] ss:$16 sps:$4 sm:$0xff]  }
  0xa5   :  { %v2584_v6 = vld [vmem:[%s3446_s1 + $0x58c] ss:$16 sps:$4 sm:$0xff]   ;;  %v2579_v7 = vld [vmem:[%s3446_s1 + $0x580] ss:$16 sps:$4 sm:$0xff]   ;;  %v2582_v8 = vld [vmem:[%s3446_s1 + $0x588] ss:$16 sps:$4 sm:$0xff]  }
  0xa6   :  { %v2587_v9 = vld [vmem:[%s3446_s1 + $0x5a4] ss:$16 sps:$4 sm:$0xff]   ;;  %v2590_v10 = vld [vmem:[%s3446_s1 + $0x5ac] ss:$16 sps:$4 sm:$0xff]   ;;  %v2585_v11 = vld [vmem:[%s3446_s1 + $0x5a0] ss:$16 sps:$4 sm:$0xff]  }
  0xa7   :  { %1405 = vmatpush1.bf16.msra.mxu0 %v2561_v59  ;;  %1569 = vmatpush1.bf16.msra.mxu1 %v2564_v60  ;;  %v2588_v12 = vld [vmem:[%s3446_s1 + $0x5a8] ss:$16 sps:$4 sm:$0xff]   ;;  %v2593_v13 = vld [vmem:[%s3446_s1 + $0x5c4] ss:$16 sps:$4 sm:$0xff]   ;;  %v2596_v14 = vld [vmem:[%s3446_s1 + $0x5cc] ss:$16 sps:$4 sm:$0xff]  }
  0xa8   :  { %1406 = vmatprep.subr.bf16.mxu0 %v2569_v61  ;;  %1570 = vmatprep.subr.bf16.mxu1 %v2572_v62  ;;  %v2591_v15 = vld [vmem:[%s3446_s1 + $0x5c0] ss:$16 sps:$4 sm:$0xff]   ;;  %v2594_v17 = vld [vmem:[%s3446_s1 + $0x5c8] ss:$16 sps:$4 sm:$0xff]   ;;  %v2599_v20 = vld [vmem:[%s3446_s1 + $0x5e4] ss:$16 sps:$4 sm:$0xff]  }
  0xa9   :  { %v2602_v21 = vld [vmem:[%s3446_s1 + $0x5ec] ss:$16 sps:$4 sm:$0xff]   ;;  %v2597_v22 = vld [vmem:[%s3446_s1 + $0x5e0] ss:$16 sps:$4 sm:$0xff]   ;;  %v2600_v23 = vld [vmem:[%s3446_s1 + $0x5e8] ss:$16 sps:$4 sm:$0xff]  }
  0xaa   :  { %v2606_v24 = vld [vmem:[%s3446_s1 + $0x604] ss:$16 sps:$4 sm:$0xff]   ;;  %v2609_v25 = vld [vmem:[%s3446_s1 + $0x60c] ss:$16 sps:$4 sm:$0xff]   ;;  %v2604_v26 = vld [vmem:[%s3446_s1 + $0x600] ss:$16 sps:$4 sm:$0xff]  }
  0xab   :  { %1407 = vmatpush1.bf16.msra.mxu0 %v2567_v63  ;;  %1571 = vmatpush1.bf16.msra.mxu1 %v2570_v0  ;;  %v2607_v27 = vld [vmem:[%s3446_s1 + $0x608] ss:$16 sps:$4 sm:$0xff]   ;;  %v2612_v16 = vld [vmem:[%s3446_s1 + $0x624] ss:$16 sps:$4 sm:$0xff]   ;;  %v2615_v28 = vld [vmem:[%s3446_s1 + $0x62c] ss:$16 sps:$4 sm:$0xff]  }
  0xac   :  { %1408 = vmatprep.subr.bf16.mxu0 %v2575_v1  ;;  %1572 = vmatprep.subr.bf16.mxu1 %v2578_v2  ;;  %v2610_v29 = vld [vmem:[%s3446_s1 + $0x620] ss:$16 sps:$4 sm:$0xff]   ;;  %v2613_v30 = vld [vmem:[%s3446_s1 + $0x628] ss:$16 sps:$4 sm:$0xff]   ;;  %v2673_v33 = vmov 0   ;;  %vm1300_vm0 = vcmask 261120  }
  0xad   :  { %v2616_v31 = vld [vmem:[%s3448_s3 + $0x40] sm:$0xff]   ;;  %v2620_v36 = vld [vmem:[%s3448_s3 + $0x48] sm:$0xff]   ;;  %v2624_v39 = vld [vmem:[%s3448_s3 + $0x50] sm:$0xff]   ;;  %vm1903_vm1 = vcmask 1041408   ;;  %v227_v0 = vsub.s32 0, %v2822_v42  ;;  %v235_v1 = vsub.s32 2, %v2822_v42 }
  0xae   :  { %v2617_v32 = vld [vmem:[%s3448_s3 + $0xc0] sm:$0xff]   ;;  %v2621_v37 = vld [vmem:[%s3448_s3 + $0xc8] sm:$0xff]   ;;  %v2625_v40 = vld [vmem:[%s3448_s3 + $0xd0] sm:$0xff]   ;;  %vm1899_vm2 = vcmask 949248   ;;  %s2674_s19 = smov [#allocation2]   ;;  %vm1987_vm3 = vcmask 74752  }
  0xaf   :  { %1409 = vmatpush1.bf16.msra.mxu0 %v2573_v3  ;;  %1573 = vmatpush1.bf16.msra.mxu1 %v2576_v4  ;;  %v2618_v18 = vld [vmem:[%s3448_s3] sm:$0xff]   ;;  %v2623_v38 = vld [vmem:[%s3448_s3 + $0x88] sm:$0xff]   ;;  %v2626_v41 = vld [vmem:[%s3448_s3 + $0x10] sm:$0xff]   ;;  %v231_v3 = vsub.s32 1, %v2822_v42  ;;  %v239_v4 = vsub.s32 3, %v2822_v42  ;;  %s1995_s0 = sshll.u32 %s2674_s19, 4  ;;  %s1996_s0 = int_to_ptr.vmem [resolvable:$true] %s1995_s0 }
  0xb0   :  { %1410 = vmatprep.subr.bf16.mxu0 %v2581_v5  ;;  %1574 = vmatprep.subr.bf16.mxu1 %v2584_v6  ;;  %v2619_v35 = vld [vmem:[%s3448_s3 + $0x80] sm:$0xff]   ;;  %v2627_v43 = vld [vmem:[%s3448_s3 + $0x90] sm:$0xff]   ;;  %v2628_v44 = vld [vmem:[%s3448_s3 + $0x58] sm:$0xff]   ;;  %s2648_s20 = scalar_lea.vmem %s1996_s0, 32  ;;  %p2653_p1 = scmp.lt.s32.totalorder %s1996_s0, %s1996_s0 }
  0xb1   :  { %v2629_v45 = vld [vmem:[%s3448_s3 + $0xd8] sm:$0xff]   ;;  %v2632_v48 = vld [vmem:[%s3448_s3 + $0x60] sm:$0xff]   ;;  %v2636_v52 = vld [vmem:[%s3448_s3 + $0x68] sm:$0xff]   ;;  %p2649_p0 = scmp.ne.s32.totalorder %s1996_s0, %s2648_s20  ;;  %p2654_p2 = scmp.lt.s32.totalorder %s2648_s20, %s2648_s20 }
  0xb2   :  { %v2630_v46 = vld [vmem:[%s3448_s3 + $0x18] sm:$0xff]   ;;  %v2633_v49 = vld [vmem:[%s3448_s3 + $0xe0] sm:$0xff]   ;;  %v2637_v53 = vld [vmem:[%s3448_s3 + $0xe8] sm:$0xff]  }
  0xb3   :  { %1411 = vmatpush1.bf16.msra.mxu0 %v2579_v7  ;;  %1575 = vmatpush1.bf16.msra.mxu1 %v2582_v8  ;;  %v2631_v47 = vld [vmem:[%s3448_s3 + $0x98] sm:$0xff]   ;;  %v2634_v50 = vld [vmem:[%s3448_s3 + $0x20] sm:$0xff]   ;;  %v2638_v54 = vld [vmem:[%s3448_s3 + $0x28] sm:$0xff]   ;;  %p2655_p3 = por %p2654_p2, %p2653_p1 }
  0xb4   :  { %1412 = vmatprep.subr.bf16.mxu0 %v2587_v9  ;;  %1576 = vmatprep.subr.bf16.mxu1 %v2590_v10  ;;  %v2635_v51 = vld [vmem:[%s3448_s3 + $0xa0] sm:$0xff]   ;;  %v2639_v55 = vld [vmem:[%s3448_s3 + $0xa8] sm:$0xff]   ;;  %v2640_v56 = vld [vmem:[%s3448_s3 + $0x70] sm:$0xff]  }
  0xb5   :  { %v2641_v57 = vld [vmem:[%s3448_s3 + $0xf0] sm:$0xff]   ;;  %v2644_v60 = vld [vmem:[%s3448_s3 + $0x78] sm:$0xff]   ;;  %v223_v2 = vld [vmem:[%s3447_s2] sm:$0xf]  ;;  %p2656_p4 = pnand %p2655_p3, %p2649_p0 }
  0xb6   :  { %v2642_v58 = vld [vmem:[%s3448_s3 + $0x30] sm:$0xff]   ;;  %v2645_v61 = vld [vmem:[%s3448_s3 + $0xf8] ss:$0 sps:$4 sm:$0x33]   ;;  %v228_v5 = vrot.slane %v223_v2, %v227_v0  ;;  %v236_v6 = vrot.slane %v223_v2, %v235_v1  ;;  %v232_v7 = vrot.slane %v223_v2, %v231_v3  ;;  %v240_v8 = vrot.slane %v223_v2, %v239_v4 }
  0xb7   :  { %1413 = vmatpush1.bf16.msra.mxu0 %v2585_v11  ;;  %1577 = vmatpush1.bf16.msra.mxu1 %v2588_v12  ;;  %v2643_v59 = vld [vmem:[%s3448_s3 + $0xb0] sm:$0xff]   ;;  %v2646_v62 = vld [vmem:[%s3448_s3 + $0x38] sm:$0xff]  }
  0xb8   :  { %1414 = vmatprep.subr.bf16.mxu0 %v2593_v13  ;;  %1578 = vmatprep.subr.bf16.mxu1 %v2596_v14  ;;  %v2647_v63 = vld [vmem:[%s3448_s3 + $0xb8] sm:$0xff]  }
  0xbb   :  { %1415 = vmatpush1.bf16.msra.mxu0 %v2591_v15  ;;  %1579 = vmatpush1.bf16.msra.mxu1 %v2594_v17 }
  0xbc   :  { %1416 = vmatprep.subr.bf16.mxu0 %v2599_v20  ;;  %1580 = vmatprep.subr.bf16.mxu1 %v2602_v21 }
  0xbf   :  { %1417 = vmatpush1.bf16.msra.mxu0 %v2597_v22  ;;  %1581 = vmatpush1.bf16.msra.mxu1 %v2600_v23 }
  0xc0   :  { %1427 = vmatprep.subr.bf16.mxu0 %v2606_v24  ;;  %1591 = vmatprep.subr.bf16.mxu1 %v2609_v25 }
  0xc2   :  { %1419 = vmatmul.mubr.bf16.vlgmr.msra.gmra.mrb[0].mxu0 %v2919_v19  ;;  %1583 = vmatmul.mubr.bf16.vlgmr.msra.gmra.mrb[0].mxu1 %v2919_v19  ;;  %v2622_v19 = vld [vmem:[%s3448_s3 + $0x8] sm:$0xff]  }
  0xc3   :  { %1428 = vmatpush1.bf16.msra.mxu0 %v2604_v26  ;;  %1592 = vmatpush1.bf16.msra.mxu1 %v2607_v27 }
  0xc4   :  { %1429 = vmatprep.subr.bf16.mxu0 %v2612_v16  ;;  %1593 = vmatprep.subr.bf16.mxu1 %v2615_v28 }
  0xc5   :  { %1459 = vmatprep.mubr.bf16.mxu0 %v2673_v33  ;;  %1623 = vmatprep.mubr.bf16.mxu1 %v2673_v33 }
  0xc7   :  { %1430 = vmatpush1.bf16.msra.mxu0 %v2610_v29  ;;  %1594 = vmatpush1.bf16.msra.mxu1 %v2613_v30 }
  0xc8   :  { %2239 = vmatprep.subr.bf16.mxu0 %v2616_v31  ;;  %2261 = vmatprep.subr.bf16.mxu1 %v2617_v32  ;;  %v2205_v32 = vld [vmem:[%s3449_s4] ss:$0 sm:$0xff] }
  0xce   :  { %2203 = vmatmul.mubr.msk.bf16.vlgmr.msra.gmra.mrb[0].mxu0 %vm1300_vm0, %v292_v34  ;;  %2204 = vmatmul.mubr.msk.bf16.vlgmr.msra.gmra.mrb[0].mxu1 %vm1300_vm0, %v292_v34 }
  0xcf   :  { %2240 = vmatpush3.bf16.msra.mxu0 %v2618_v18  ;;  %2262 = vmatpush3.bf16.msra.mxu1 %v2619_v35 }
  0xd0   :  { %2241 = vmatprep.subr.bf16.mxu0 %v2620_v36  ;;  %2263 = vmatprep.subr.bf16.mxu1 %v2621_v37 }
  0xd3   :  { %2242 = vmatpush3.bf16.msra.mxu0 %v2622_v19  ;;  %2264 = vmatpush3.bf16.msra.mxu1 %v2623_v38 }
  0xd4   :  { %2243 = vmatprep.subr.bf16.mxu0 %v2624_v39  ;;  %2265 = vmatprep.subr.bf16.mxu1 %v2625_v40 }
  0xd7   :  { %2244 = vmatpush3.bf16.msra.mxu0 %v2626_v41  ;;  %2266 = vmatpush3.bf16.msra.mxu1 %v2627_v43 }
  0xd8   :  { %2245 = vmatprep.subr.bf16.mxu0 %v2628_v44  ;;  %2267 = vmatprep.subr.bf16.mxu1 %v2629_v45 }
  0xdb   :  { %2246 = vmatpush3.bf16.msra.mxu0 %v2630_v46  ;;  %2268 = vmatpush3.bf16.msra.mxu1 %v2631_v47 }
  0xdc   :  { %2247 = vmatprep.subr.bf16.mxu0 %v2632_v48  ;;  %2269 = vmatprep.subr.bf16.mxu1 %v2633_v49 }
  0xdf   :  { %2248 = vmatpush3.bf16.msra.mxu0 %v2634_v50  ;;  %2270 = vmatpush3.bf16.msra.mxu1 %v2635_v51 }
  0xe0   :  { %2249 = vmatprep.subr.bf16.mxu0 %v2636_v52  ;;  %2271 = vmatprep.subr.bf16.mxu1 %v2637_v53 }
  0xe3   :  { %2250 = vmatpush3.bf16.msra.mxu0 %v2638_v54  ;;  %2272 = vmatpush3.bf16.msra.mxu1 %v2639_v55 }
  0xe4   :  { %2251 = vmatprep.subr.bf16.mxu0 %v2640_v56  ;;  %2273 = vmatprep.subr.bf16.mxu1 %v2641_v57 }
  0xe7   :  { %2252 = vmatpush3.bf16.msra.mxu0 %v2642_v58  ;;  %2274 = vmatpush3.bf16.msra.mxu1 %v2643_v59 }
  0xe8   :  { %2253 = vmatprep.subr.bf16.mxu0 %v2644_v60  ;;  %2311 = vmatprep.subr.msk.bf16.mxu1 %vm1903_vm1, %v2645_v61 }
  0xeb   :  { %2254 = vmatpush3.bf16.msra.mxu0 %v2646_v62  ;;  %2276 = vmatpush3.bf16.msra.mxu1 %v2647_v63 }
 0x1a1   :  { %v1461_v9 = vpop.f32.mrb[0].mxu0  ;;  %v1625_v10 = vpop.f32.mrb[0].mxu1 }
 0x1a2   :  { %v2283_v11 = vadd.f32 %v1461_v9, %v228_v5  ;;  %v2285_v12 = vadd.f32 %v1625_v10, %v236_v6  ;;  %v1463_v13 = vpop.f32.mrb[1].mxu0  ;;  %v1627_v14 = vpop.f32.mrb[1].mxu1 }
 0x1a3   :  { %v2284_v15 = vadd.f32 %v1463_v13, %v232_v7  ;;  %v2286_v17 = vadd.f32 %v1627_v14, %v240_v8  ;;  %v1465_v20 = vpop.f32.mrb[2].mxu0  ;;  %v1629_v21 = vpop.f32.mrb[2].mxu1 }
 0x1a4   :  { %v1632_v22 = vmax.f32 %v2283_v11, 0.0  ;;  %v1634_v23 = vmax.f32 %v2285_v12, 0.0  ;;  %v1466_v24 = vpop.f32.mrb[3].mxu0  ;;  %v1630_v25 = vpop.f32.mrb[3].mxu1 }
 0x1a5   :  { %v1633_v26 = vmax.f32 %v2284_v15, 0.0  ;;  %v1635_v42 = vmax.f32 %v2286_v17, 0.0 }
 0x1a6   :  { %v1636_v28 = vpack.c.bf16 %v1632_v22, %v1632_v22  ;;  %v1638_v29 = vpack.c.bf16 %v1634_v23, %v1634_v23 }
 0x1a7   :  { %v1637_v27 = vpack.c.bf16 %v1633_v26, %v1633_v26  ;;  %v1639_v16 = vpack.c.bf16 %v1635_v42, %v1635_v42 }
 0x1a9   :  { %1939 = vmatprep.mubr.bf16.mxu0 %v1637_v27  ;;  %2238 = vmatprep.mubr.msk.bf16.mxu1 %vm1899_vm2, %v1639_v16 }
 0x1aa   :  { %1940 = vmatmul.mubr.bf16.vlgmr.msra.gmra.mrb[4].mxu0 %v1636_v28  ;;  %1980 = vmatmul.mubr.bf16.vlgmr.msra.gmra.mrb[4].mxu1 %v1638_v29 }
 0x27d   :  { %v2255_v30 = vpop.f32.mrb[4].mxu0  ;;  %v2277_v31 = vpop.f32.mrb[4].mxu1 }
 0x27e   :  { %v2256_v33 = vpop.f32.mrb[5].mxu0  ;;  %v2278_v34 = vpop.f32.mrb[5].mxu1 }
 0x27f   :  { %v2257_v18 = vadd.f32 %v2256_v33, %v2255_v30  ;;  %v2279_v35 = vadd.f32 %v2278_v34, %v2277_v31  ;;  %v2258_v36 = vpop.f32.mrb[6].mxu0  ;;  %v2280_v37 = vpop.f32.mrb[6].mxu1 }
 0x280   :  { %v2259_v19 = vpop.f32.mrb[7].mxu0  ;;  %v2281_v38 = vpop.f32.mrb[7].mxu1 }
 0x281   :  { %v1942_v39 = vadd.f32 %v2257_v18, %v2205_v32 }
 0x283   :  { %v1982_v40 = vadd.f32 %v2279_v35, %v1942_v39 }
 0x285   :  { %1988 = vst.msk [vmem:[#allocation2] sm:$0x3] %vm1987_vm3, %v1982_v40 }
 0x286   :  { %2659 = shalt.err (!%p2656_p4)
}
 0x287   :  { %s2660_s22 = scalar_lea.hbm %s3450_s5, 32 }
 0x288   :  { %p2661_p5 = scmp.ne.s32.totalorder %s3450_s5, %s2660_s22  ;;  %p2664_p6 = scmp.lt.u32.totalorder %s2660_s22, %s3450_s5 }
 0x28a   :  { %p2666_p7 = pnand %p2664_p6, %p2661_p5 }
 0x28c   :  { %2669 = shalt.err (!%p2666_p7)
}
 0x28d   :  { %1998 = dma.vmem_to_hbm [thread:$0]  %s1996_s0, 32, %s3450_s5, [#allocation3]  }
 0x28e   :  { %2670 = dma.done.wait [#allocation3], 32  }
 0x28f   :  { %2671 = vsyncadd [#allocation3], 4294967264 }
 0x290   :  { %2002 = vsyncpa [#allocation3], 1 }

</bundles_post_ra>
